<compile_context>
chip_gen: v5e
topology: v5e:2x2
jax: 0.10.0
libtpu: 0.0.40
codegen_flags: <defaults>
</compile_context>

<pallas_src>
import math
import functools
import numpy as np
import jax
import jax.numpy as jnp
from jax.experimental import pallas as pl
from jax.experimental.pallas import tpu as pltpu


def _silu(x):
    return x * jax.nn.sigmoid(x)


def _encoder_kernel(x_ref, scale_ref, wfeat_ref, wqkv_ref, bqkv_ref,
                    wo_ref, bo_ref, gamma_ref, beta_ref, out_ref,
                    *, num_heads, max_terms, d_k, d_v):
    f32 = jnp.float32
    H = num_heads
    x = x_ref[...].astype(f32)                           # [TB, I] (native dtype in HBM)
    xs = x * scale_ref[...]                              # learnable per-feature scale

    # --- Chebyshev polynomials (1st kind): T0=1, T1=x, Tn = 2x*T(n-1) - T(n-2),
    # concatenated m-major along lanes -> [TB, M*I].
    polys = [jnp.ones_like(xs), xs]
    for _ in range(2, max_terms):
        polys.append(2.0 * xs * polys[-1] - polys[-2])
    poly_cat = jnp.concatenate(polys[:max_terms], axis=-1)
    poly_cat = poly_cat.astype(wfeat_ref.dtype)          # bf16 MXU path when weights are bf16

    # --- ONE matmul for all heads' feature transforms: [TB, M*I] @ [M*I, H*D]
    feat_cat = jnp.dot(poly_cat, wfeat_ref[...], preferred_element_type=f32)
    feat_cat = _silu(feat_cat)                           # [TB, H*D], f32
    # TODO(synk): residual=True path not implemented; module default is residual=False.

    # --- fused Q/K/V for all heads (block-diagonal folded weights): ONE matmul
    qkv = jnp.dot(feat_cat, wqkv_ref[...].astype(f32),
                  preferred_element_type=f32) + bqkv_ref[...]     # [TB, H*(2*d_k+d_v)]
    k_off = H * d_k
    v_off = 2 * H * d_k
    qs = [qkv[:, h * d_k:(h + 1) * d_k] for h in range(H)]        # [TB, d_k] lane slices
    ks = [qkv[:, k_off + h * d_k:k_off + (h + 1) * d_k] for h in range(H)]
    vs = [qkv[:, v_off + h * d_v:v_off + (h + 1) * d_v] for h in range(H)]

    # --- cross-head softmax attention (head axis is tiny -> keep it unrolled, no relayout)
    inv_sqrt_dk = 1.0 / math.sqrt(d_k)
    atts = []
    for h in range(H):
        s_list = [jnp.sum(qs[h] * ks[g], axis=-1, keepdims=True) * inv_sqrt_dk
                  for g in range(H)]                     # each [TB, 1]
        s_max = functools.reduce(jnp.maximum, s_list)
        exps = [jnp.exp(s - s_max) for s in s_list]
        denom = functools.reduce(lambda a, b: a + b, exps)
        inv_denom = pl.reciprocal(denom, approx=True)    # EUP; one divide per head
        att = jnp.zeros_like(vs[0])
        for g in range(H):
            att = att + (exps[g] * inv_denom) * vs[g]    # [TB, d_v]
        atts.append(att)
    att_cat = jnp.concatenate(atts, axis=-1)             # [TB, H*d_v]

    # --- fused output projection: [TB, H*d_v] @ [H*d_v, HD] against the original wo
    y = jnp.dot(att_cat, wo_ref[...].astype(f32), preferred_element_type=f32) + bo_ref[...]

    # --- LayerNorm over the full output dim (eps = 1e-5), one-pass mean / E[x^2]
    inv_n = 1.0 / y.shape[-1]
    mean = jnp.sum(y, axis=-1, keepdims=True) * inv_n
    mean_sq = jnp.sum(y * y, axis=-1, keepdims=True) * inv_n
    var = mean_sq - mean * mean
    y = (y - mean) * jax.lax.rsqrt(var + 1e-5)
    y = y * gamma_ref[...] + beta_ref[...]
    out_ref[...] = y.astype(out_ref.dtype)


def orthogonal_polynomial_encoder(x, params, *, num_heads, max_terms, kernel_size,
                                  d_k=32, d_v=32, block_b=256,
                                  weight_dtype=jnp.bfloat16):
    B, input_size = x.shape
    I, M, K, H = input_size, max_terms, kernel_size, num_heads
    D = I * M * K
    HD = H * D
    QKV = H * (2 * d_k + d_v)

    # ---- parameter glue (plain JAX, once per call) -----------------------------------
    # wfeat[m*I + j, h*D + (i,a,k)] = eye[j,i] * pw[h,i,a] * kern[h,i,m,k] so that
    #   feat[b, h*D + (i,a,k)] = sum_m T_m(xs[b,i]) * pw[h,i,a] * kern[h,i,m,k].
    # TODO(synk): wfeat is block-diagonal over the input-feature axis (scales as
    # I^2*M^2*K per head); for large input_size stream per-feature slabs instead of
    # materializing the zeros.
    eye_i = jnp.eye(I, dtype=jnp.float32)
    w6 = jnp.einsum('ji,hia,himk->mjhiak', eye_i,
                    params['poly_weights'].astype(jnp.float32),
                    params['kernels'].astype(jnp.float32))
    wfeat = w6.reshape(M * I, HD).astype(weight_dtype)

    # block-diagonal fold so Q/K/V over row-stacked heads become ONE lane-wise matmul
    eye_h = jnp.eye(H, dtype=jnp.float32)

    def bd(w):  # [D, dout] -> [H*D, H*dout] block-diagonal
        w = w.astype(jnp.float32)
        return jnp.einsum('hg,da->hdga', eye_h, w).reshape(H * D, H * w.shape[1])

    wqkv = jnp.concatenate([bd(params['wq']), bd(params['wk']), bd(params['wv'])],
                           axis=1).astype(weight_dtype)                       # [H*D, QKV]
    bqkv = jnp.concatenate([jnp.tile(params['bq'], H),
                            jnp.tile(params['bk'], H),
                            jnp.tile(params['bv'], H)]).reshape(1, QKV).astype(jnp.float32)
    wo = params['wo'].astype(weight_dtype)                                    # [H*d_v, HD]

    # ---- batch tiling (multiple of 8 rows per tile; pad + slice if B is ragged) ------
    TB = min(block_b, max(B, 8))
    TB = max(8, (TB // 8) * 8)
    n_b = pl.cdiv(B, TB)
    B_pad = n_b * TB
    x_in = x if B_pad == B else jnp.pad(x, ((0, B_pad - B), (0, 0)))

    def full(shape):
        return pl.BlockSpec(shape, lambda b, _n=len(shape): (0,) * _n)

    kernel = functools.partial(_encoder_kernel, num_heads=H, max_terms=M,
                               d_k=d_k, d_v=d_v)
    out = pl.pallas_call(
        kernel,
        out_shape=jax.ShapeDtypeStruct((B_pad, HD), jnp.float32),
        grid=(n_b,),
        in_specs=[
            pl.BlockSpec((TB, I), lambda b: (b, 0)),        # x (native dtype)
            full((1, I)),                                   # scale
            full((M * I, HD)),                              # fused all-head feature weights
            full((H * D, QKV)), full((1, QKV)),             # fused block-diag Wqkv, bias
            full((H * d_v, HD)), full((1, HD)),             # Wo, bo
            full((1, HD)), full((1, HD)),                   # LayerNorm gamma, beta
        ],
        out_specs=pl.BlockSpec((TB, HD), lambda b: (b, 0)),
        compiler_params=pltpu.CompilerParams(dimension_semantics=("parallel",)),
    )(x_in,
      params['scale'].reshape(1, I).astype(jnp.float32),
      wfeat, wqkv, bqkv,
      wo, params['bo'].reshape(1, HD).astype(jnp.float32),
      params['gamma'].reshape(1, HD).astype(jnp.float32),
      params['beta'].reshape(1, HD).astype(jnp.float32))
    return out[:B] if B_pad != B else out


# ---- pure-JAX reference mirroring the PyTorch forward (for verification) -------------
def reference_forward(x, params, *, num_heads, max_terms, kernel_size, d_k=32, d_v=32):
    B, I = x.shape
    M, K, H = max_terms, kernel_size, num_heads
    xs = x * params['scale']
    polys = [jnp.ones_like(xs), xs]
    for _ in range(2, M):
        polys.append(2.0 * xs * polys[-1] - polys[-2])
    x_poly = jnp.stack(polys[:M], axis=-1)                                  # [B, I, M]
    heads = []
    for h in range(H):
        x_head = jnp.einsum('bim,imk->bik', x_poly, params['kernels'][h])   # [B, I, K]
        w = params['poly_weights'][h][None, :, :, None]                     # [1, I, M, 1]
        xw = x_head[:, :, None, :] * w                                      # [B, I, M, K]
        xw = xw * jax.nn.sigmoid(xw)                                        # SiLU
        heads.append(xw.reshape(B, -1))
    x_heads = jnp.stack(heads, axis=1)                                      # [B, H, D]
    D = x_heads.shape[-1]
    flat = x_heads.reshape(B * H, D)
    q = (flat @ params['wq'] + params['bq']).reshape(B, H, d_k)
    k = (flat @ params['wk'] + params['bk']).reshape(B, H, d_k)
    v = (flat @ params['wv'] + params['bv']).reshape(B, H, d_v)
    scores = jnp.einsum('bhk,bgk->bhg', q, k) / math.sqrt(d_k)
    attn = jax.nn.softmax(scores, axis=-1)
    att = jnp.einsum('bhg,bgv->bhv', attn, v).reshape(B, H * d_v)
    out = att @ params['wo'] + params['bo']
    mean = out.mean(-1, keepdims=True)
    var = ((out - mean) ** 2).mean(-1, keepdims=True)
    out = (out - mean) / jnp.sqrt(var + 1e-5)
    return out * params['gamma'] + params['beta']


if __name__ == "__main__":
    B, I, M, K, H = 64, 4, 8, 5, 2          # batch, input_size, max_terms, kernel_size, num_heads
    d_k = d_v = 32
    D = I * M * K
    HD = H * D

    key = jax.random.PRNGKey(0)
    keys = jax.random.split(key, 12)
    params = {
        'scale': jnp.ones((I,), jnp.float32),                                # nn.Parameter(ones)
        'poly_weights': jax.random.normal(keys[0], (H, I, M), jnp.float32),  # randn
        'kernels': jax.random.normal(keys[1], (H, I, M, K), jnp.float32),    # randn
        'wq': jax.random.normal(keys[2], (D, d_k), jnp.float32) / math.sqrt(D),
        'bq': jax.random.normal(keys[3], (d_k,), jnp.float32) * 0.01,
        'wk': jax.random.normal(keys[4], (D, d_k), jnp.float32) / math.sqrt(D),
        'bk': jax.random.normal(keys[5], (d_k,), jnp.float32) * 0.01,
        'wv': jax.random.normal(keys[6], (D, d_v), jnp.float32) / math.sqrt(D),
        'bv': jax.random.normal(keys[7], (d_v,), jnp.float32) * 0.01,
        'wo': jax.random.normal(keys[8], (H * d_v, HD), jnp.float32) / math.sqrt(H * d_v),
        'bo': jax.random.normal(keys[9], (HD,), jnp.float32) * 0.01,
        'gamma': jnp.ones((HD,), jnp.float32),                               # LayerNorm weight
        'beta': jnp.zeros((HD,), jnp.float32),                               # LayerNorm bias
    }
    x = jax.random.uniform(keys[10], (B, I), jnp.float32, minval=-1.0, maxval=1.0)

    ref = reference_forward(x, params, num_heads=H, max_terms=M,
                            kernel_size=K, d_k=d_k, d_v=d_v)

    # 1) strict fidelity check: f32 weights (block_b=32 -> grid of 2 batch tiles, so the
    #    pipeline / megacore sharding path is exercised).
    out_f32 = orthogonal_polynomial_encoder(x, params, num_heads=H, max_terms=M,
                                            kernel_size=K, d_k=d_k, d_v=d_v,
                                            block_b=32, weight_dtype=jnp.float32)
    out_f32 = jax.block_until_ready(out_f32)
    assert out_f32.shape == (B, HD), out_f32.shape
    # tolerance accounts for TPU default matmul precision differences vs. the JAX reference
    np.testing.assert_allclose(np.asarray(out_f32), np.asarray(ref), atol=5e-2, rtol=5e-2)

    # 2) default fast path: bf16 weight storage / bf16 feature matmul. Looser tolerance
    #    budgets for the deliberate bf16 weight quantization (not kernel error).
    out_bf16 = orthogonal_polynomial_encoder(x, params, num_heads=H, max_terms=M,
                                             kernel_size=K, d_k=d_k, d_v=d_v,
                                             block_b=32)
    out_bf16 = jax.block_until_ready(out_bf16)
    assert out_bf16.shape == (B, HD), out_bf16.shape
    np.testing.assert_allclose(np.asarray(out_bf16), np.asarray(ref), atol=2e-1, rtol=2e-1)

    print("KERNEL_OK")
</pallas_src>

<mosaic_0001>
module attributes {stable_mosaic.version = 11 : i64} {
  func.func @_encoder_kernel(%arg0: i32, %arg1: memref<32x4xf32, #tpu.memory_space<vmem>>, %arg2: memref<1x4xf32, #tpu.memory_space<vmem>>, %arg3: memref<32x320xf32, #tpu.memory_space<vmem>>, %arg4: memref<320x192xf32, #tpu.memory_space<vmem>>, %arg5: memref<1x192xf32, #tpu.memory_space<vmem>>, %arg6: memref<64x320xf32, #tpu.memory_space<vmem>>, %arg7: memref<1x320xf32, #tpu.memory_space<vmem>>, %arg8: memref<1x320xf32, #tpu.memory_space<vmem>>, %arg9: memref<1x320xf32, #tpu.memory_space<vmem>>, %arg10: memref<32x320xf32, #tpu.memory_space<vmem>>) attributes {dimension_semantics = [#tpu.dimension_semantics<parallel>], iteration_bounds = array<i64: 2>, scalar_prefetch = 0 : i64, scratch_operands = 0 : i64, tpu.core_type = #tpu.core_type<tc>, window_params = [{transform_indices = @transform_0, window_bounds = array<i64: 32, 4>}, {pipeline_mode = #tpu.pipeline_mode<synchronous>, transform_indices = @transform_1, window_bounds = array<i64: 1, 4>}, {pipeline_mode = #tpu.pipeline_mode<synchronous>, transform_indices = @transform_2, window_bounds = array<i64: 32, 320>}, {pipeline_mode = #tpu.pipeline_mode<synchronous>, transform_indices = @transform_3, window_bounds = array<i64: 320, 192>}, {pipeline_mode = #tpu.pipeline_mode<synchronous>, transform_indices = @transform_4, window_bounds = array<i64: 1, 192>}, {pipeline_mode = #tpu.pipeline_mode<synchronous>, transform_indices = @transform_5, window_bounds = array<i64: 64, 320>}, {pipeline_mode = #tpu.pipeline_mode<synchronous>, transform_indices = @transform_6, window_bounds = array<i64: 1, 320>}, {pipeline_mode = #tpu.pipeline_mode<synchronous>, transform_indices = @transform_7, window_bounds = array<i64: 1, 320>}, {pipeline_mode = #tpu.pipeline_mode<synchronous>, transform_indices = @transform_8, window_bounds = array<i64: 1, 320>}, {transform_indices = @transform_9, window_bounds = array<i64: 32, 320>}]} {
    %c0 = arith.constant 0 : index
    %c0_0 = arith.constant 0 : index
    %0 = vector.load %arg1[%c0, %c0_0] : memref<32x4xf32, #tpu.memory_space<vmem>>, vector<32x4xf32>
    %c0_1 = arith.constant 0 : index
    %c0_2 = arith.constant 0 : index
    %1 = vector.load %arg2[%c0_1, %c0_2] : memref<1x4xf32, #tpu.memory_space<vmem>>, vector<1x4xf32>
    %2 = vector.broadcast %1 : vector<1x4xf32> to vector<32x4xf32>
    %3 = arith.mulf %0, %2 : vector<32x4xf32>
    %cst = arith.constant 1.000000e+00 : f32
    %4 = vector.broadcast %cst : f32 to vector<32x4xf32>
    %cst_3 = arith.constant 2.000000e+00 : f32
    %5 = vector.broadcast %cst_3 : f32 to vector<32x4xf32>
    %6 = arith.mulf %5, %3 : vector<32x4xf32>
    %7 = arith.mulf %6, %3 : vector<32x4xf32>
    %8 = arith.subf %7, %4 : vector<32x4xf32>
    %cst_4 = arith.constant 2.000000e+00 : f32
    %9 = vector.broadcast %cst_4 : f32 to vector<32x4xf32>
    %10 = arith.mulf %9, %3 : vector<32x4xf32>
    %11 = arith.mulf %10, %8 : vector<32x4xf32>
    %12 = arith.subf %11, %3 : vector<32x4xf32>
    %cst_5 = arith.constant 2.000000e+00 : f32
    %13 = vector.broadcast %cst_5 : f32 to vector<32x4xf32>
    %14 = arith.mulf %13, %3 : vector<32x4xf32>
    %15 = arith.mulf %14, %12 : vector<32x4xf32>
    %16 = arith.subf %15, %8 : vector<32x4xf32>
    %cst_6 = arith.constant 2.000000e+00 : f32
    %17 = vector.broadcast %cst_6 : f32 to vector<32x4xf32>
    %18 = arith.mulf %17, %3 : vector<32x4xf32>
    %19 = arith.mulf %18, %16 : vector<32x4xf32>
    %20 = arith.subf %19, %12 : vector<32x4xf32>
    %cst_7 = arith.constant 2.000000e+00 : f32
    %21 = vector.broadcast %cst_7 : f32 to vector<32x4xf32>
    %22 = arith.mulf %21, %3 : vector<32x4xf32>
    %23 = arith.mulf %22, %20 : vector<32x4xf32>
    %24 = arith.subf %23, %16 : vector<32x4xf32>
    %cst_8 = arith.constant 2.000000e+00 : f32
    %25 = vector.broadcast %cst_8 : f32 to vector<32x4xf32>
    %26 = arith.mulf %25, %3 : vector<32x4xf32>
    %27 = arith.mulf %26, %24 : vector<32x4xf32>
    %28 = arith.subf %27, %20 : vector<32x4xf32>
    %29 = tpu.concatenate %4, %3, %8, %12, %16, %20, %24, %28 in 1 : vector<32x4xf32>, vector<32x4xf32>, vector<32x4xf32>, vector<32x4xf32>, vector<32x4xf32>, vector<32x4xf32>, vector<32x4xf32>, vector<32x4xf32> -> vector<32x32xf32>
    %c0_9 = arith.constant 0 : index
    %c0_10 = arith.constant 0 : index
    %30 = vector.load %arg3[%c0_9, %c0_10] : memref<32x320xf32, #tpu.memory_space<vmem>>, vector<32x320xf32>
    %cst_11 = arith.constant dense<0.000000e+00> : vector<32x320xf32>
    %31 = tpu.matmul %29, %30, %cst_11 {dimension_numbers = #tpu.dot_dimension_numbers<[1], [0], [0], [1], [0, 0, 1, 1], [], []>} : vector<32x32xf32>, vector<32x320xf32>, vector<32x320xf32> -> vector<32x320xf32>
    %32 = arith.negf %31 : vector<32x320xf32>
    %33 = math.exp %32 : vector<32x320xf32>
    %cst_12 = arith.constant 1.000000e+00 : f32
    %34 = vector.broadcast %cst_12 : f32 to vector<32x320xf32>
    %35 = arith.addf %34, %33 : vector<32x320xf32>
    %36 = arith.divf %34, %35 : vector<32x320xf32>
    %37 = arith.mulf %31, %36 : vector<32x320xf32>
    %c0_13 = arith.constant 0 : index
    %c0_14 = arith.constant 0 : index
    %38 = vector.load %arg4[%c0_13, %c0_14] : memref<320x192xf32, #tpu.memory_space<vmem>>, vector<320x192xf32>
    %cst_15 = arith.constant dense<0.000000e+00> : vector<32x192xf32>
    %39 = tpu.matmul %37, %38, %cst_15 {dimension_numbers = #tpu.dot_dimension_numbers<[1], [0], [0], [1], [0, 0, 1, 1], [], []>} : vector<32x320xf32>, vector<320x192xf32>, vector<32x192xf32> -> vector<32x192xf32>
    %c0_16 = arith.constant 0 : index
    %c0_17 = arith.constant 0 : index
    %40 = vector.load %arg5[%c0_16, %c0_17] : memref<1x192xf32, #tpu.memory_space<vmem>>, vector<1x192xf32>
    %41 = vector.broadcast %40 : vector<1x192xf32> to vector<32x192xf32>
    %42 = arith.addf %39, %41 : vector<32x192xf32>
    %43 = vector.extract_strided_slice %42 {offsets = [0, 0], sizes = [32, 32], strides = [1, 1]} : vector<32x192xf32> to vector<32x32xf32>
    %44 = vector.extract_strided_slice %42 {offsets = [0, 32], sizes = [32, 32], strides = [1, 1]} : vector<32x192xf32> to vector<32x32xf32>
    %45 = vector.extract_strided_slice %42 {offsets = [0, 64], sizes = [32, 32], strides = [1, 1]} : vector<32x192xf32> to vector<32x32xf32>
    %46 = vector.extract_strided_slice %42 {offsets = [0, 96], sizes = [32, 32], strides = [1, 1]} : vector<32x192xf32> to vector<32x32xf32>
    %47 = vector.extract_strided_slice %42 {offsets = [0, 128], sizes = [32, 32], strides = [1, 1]} : vector<32x192xf32> to vector<32x32xf32>
    %48 = vector.extract_strided_slice %42 {offsets = [0, 160], sizes = [32, 32], strides = [1, 1]} : vector<32x192xf32> to vector<32x32xf32>
    %49 = arith.mulf %43, %45 : vector<32x32xf32>
    %cst_18 = arith.constant dense<0.000000e+00> : vector<32xf32>
    %50 = vector.multi_reduction <add>, %49, %cst_18 [1] : vector<32x32xf32> to vector<32xf32>
    %51 = vector.shape_cast %50 : vector<32xf32> to vector<32x1xf32>
    %cst_19 = arith.constant 0.176776692 : f32
    %52 = vector.broadcast %cst_19 : f32 to vector<32x1xf32>
    %53 = arith.mulf %51, %52 : vector<32x1xf32>
    %54 = arith.mulf %43, %46 : vector<32x32xf32>
    %cst_20 = arith.constant dense<0.000000e+00> : vector<32xf32>
    %55 = vector.multi_reduction <add>, %54, %cst_20 [1] : vector<32x32xf32> to vector<32xf32>
    %56 = vector.shape_cast %55 : vector<32xf32> to vector<32x1xf32>
    %cst_21 = arith.constant 0.176776692 : f32
    %57 = vector.broadcast %cst_21 : f32 to vector<32x1xf32>
    %58 = arith.mulf %56, %57 : vector<32x1xf32>
    %59 = arith.maximumf %53, %58 : vector<32x1xf32>
    %60 = arith.subf %53, %59 : vector<32x1xf32>
    %61 = math.exp %60 : vector<32x1xf32>
    %62 = arith.subf %58, %59 : vector<32x1xf32>
    %63 = math.exp %62 : vector<32x1xf32>
    %64 = arith.addf %61, %63 : vector<32x1xf32>
    %65 = tpu.reciprocal %64 {approx = true} : vector<32x1xf32> -> vector<32x1xf32>
    %cst_22 = arith.constant 0.000000e+00 : f32
    %66 = vector.broadcast %cst_22 : f32 to vector<32x32xf32>
    %67 = arith.mulf %61, %65 : vector<32x1xf32>
    %68 = vector.broadcast %67 : vector<32x1xf32> to vector<32x32xf32>
    %69 = arith.mulf %68, %47 : vector<32x32xf32>
    %70 = arith.addf %66, %69 : vector<32x32xf32>
    %71 = arith.mulf %63, %65 : vector<32x1xf32>
    %72 = vector.broadcast %71 : vector<32x1xf32> to vector<32x32xf32>
    %73 = arith.mulf %72, %48 : vector<32x32xf32>
    %74 = arith.addf %70, %73 : vector<32x32xf32>
    %75 = arith.mulf %44, %45 : vector<32x32xf32>
    %cst_23 = arith.constant dense<0.000000e+00> : vector<32xf32>
    %76 = vector.multi_reduction <add>, %75, %cst_23 [1] : vector<32x32xf32> to vector<32xf32>
    %77 = vector.shape_cast %76 : vector<32xf32> to vector<32x1xf32>
    %cst_24 = arith.constant 0.176776692 : f32
    %78 = vector.broadcast %cst_24 : f32 to vector<32x1xf32>
    %79 = arith.mulf %77, %78 : vector<32x1xf32>
    %80 = arith.mulf %44, %46 : vector<32x32xf32>
    %cst_25 = arith.constant dense<0.000000e+00> : vector<32xf32>
    %81 = vector.multi_reduction <add>, %80, %cst_25 [1] : vector<32x32xf32> to vector<32xf32>
    %82 = vector.shape_cast %81 : vector<32xf32> to vector<32x1xf32>
    %cst_26 = arith.constant 0.176776692 : f32
    %83 = vector.broadcast %cst_26 : f32 to vector<32x1xf32>
    %84 = arith.mulf %82, %83 : vector<32x1xf32>
    %85 = arith.maximumf %79, %84 : vector<32x1xf32>
    %86 = arith.subf %79, %85 : vector<32x1xf32>
    %87 = math.exp %86 : vector<32x1xf32>
    %88 = arith.subf %84, %85 : vector<32x1xf32>
    %89 = math.exp %88 : vector<32x1xf32>
    %90 = arith.addf %87, %89 : vector<32x1xf32>
    %91 = tpu.reciprocal %90 {approx = true} : vector<32x1xf32> -> vector<32x1xf32>
    %cst_27 = arith.constant 0.000000e+00 : f32
    %92 = vector.broadcast %cst_27 : f32 to vector<32x32xf32>
    %93 = arith.mulf %87, %91 : vector<32x1xf32>
    %94 = vector.broadcast %93 : vector<32x1xf32> to vector<32x32xf32>
    %95 = arith.mulf %94, %47 : vector<32x32xf32>
    %96 = arith.addf %92, %95 : vector<32x32xf32>
    %97 = arith.mulf %89, %91 : vector<32x1xf32>
    %98 = vector.broadcast %97 : vector<32x1xf32> to vector<32x32xf32>
    %99 = arith.mulf %98, %48 : vector<32x32xf32>
    %100 = arith.addf %96, %99 : vector<32x32xf32>
    %101 = tpu.concatenate %74, %100 in 1 : vector<32x32xf32>, vector<32x32xf32> -> vector<32x64xf32>
    %c0_28 = arith.constant 0 : index
    %c0_29 = arith.constant 0 : index
    %102 = vector.load %arg6[%c0_28, %c0_29] : memref<64x320xf32, #tpu.memory_space<vmem>>, vector<64x320xf32>
    %cst_30 = arith.constant dense<0.000000e+00> : vector<32x320xf32>
    %103 = tpu.matmul %101, %102, %cst_30 {dimension_numbers = #tpu.dot_dimension_numbers<[1], [0], [0], [1], [0, 0, 1, 1], [], []>} : vector<32x64xf32>, vector<64x320xf32>, vector<32x320xf32> -> vector<32x320xf32>
    %c0_31 = arith.constant 0 : index
    %c0_32 = arith.constant 0 : index
    %104 = vector.load %arg7[%c0_31, %c0_32] : memref<1x320xf32, #tpu.memory_space<vmem>>, vector<1x320xf32>
    %105 = vector.broadcast %104 : vector<1x320xf32> to vector<32x320xf32>
    %106 = arith.addf %103, %105 : vector<32x320xf32>
    %cst_33 = arith.constant dense<0.000000e+00> : vector<32xf32>
    %107 = vector.multi_reduction <add>, %106, %cst_33 [1] : vector<32x320xf32> to vector<32xf32>
    %108 = vector.shape_cast %107 : vector<32xf32> to vector<32x1xf32>
    %cst_34 = arith.constant 3.125000e-03 : f32
    %109 = vector.broadcast %cst_34 : f32 to vector<32x1xf32>
    %110 = arith.mulf %108, %109 : vector<32x1xf32>
    %111 = arith.mulf %106, %106 : vector<32x320xf32>
    %cst_35 = arith.constant dense<0.000000e+00> : vector<32xf32>
    %112 = vector.multi_reduction <add>, %111, %cst_35 [1] : vector<32x320xf32> to vector<32xf32>
    %113 = vector.shape_cast %112 : vector<32xf32> to vector<32x1xf32>
    %cst_36 = arith.constant 3.125000e-03 : f32
    %114 = vector.broadcast %cst_36 : f32 to vector<32x1xf32>
    %115 = arith.mulf %113, %114 : vector<32x1xf32>
    %116 = arith.mulf %110, %110 : vector<32x1xf32>
    %117 = arith.subf %115, %116 : vector<32x1xf32>
    %118 = vector.broadcast %110 : vector<32x1xf32> to vector<32x320xf32>
    %119 = arith.subf %106, %118 : vector<32x320xf32>
    %cst_37 = arith.constant 9.99999974E-6 : f32
    %120 = vector.broadcast %cst_37 : f32 to vector<32x1xf32>
    %121 = arith.addf %117, %120 : vector<32x1xf32>
    %122 = math.rsqrt %121 : vector<32x1xf32>
    %123 = vector.broadcast %122 : vector<32x1xf32> to vector<32x320xf32>
    %124 = arith.mulf %119, %123 : vector<32x320xf32>
    %c0_38 = arith.constant 0 : index
    %c0_39 = arith.constant 0 : index
    %125 = vector.load %arg8[%c0_38, %c0_39] : memref<1x320xf32, #tpu.memory_space<vmem>>, vector<1x320xf32>
    %126 = vector.broadcast %125 : vector<1x320xf32> to vector<32x320xf32>
    %127 = arith.mulf %124, %126 : vector<32x320xf32>
    %c0_40 = arith.constant 0 : index
    %c0_41 = arith.constant 0 : index
    %128 = vector.load %arg9[%c0_40, %c0_41] : memref<1x320xf32, #tpu.memory_space<vmem>>, vector<1x320xf32>
    %129 = vector.broadcast %128 : vector<1x320xf32> to vector<32x320xf32>
    %130 = arith.addf %127, %129 : vector<32x320xf32>
    %c0_42 = arith.constant 0 : index
    %c0_43 = arith.constant 0 : index
    %131 = vector.load %arg10[%c0_42, %c0_43] : memref<32x320xf32, #tpu.memory_space<vmem>>, vector<32x320xf32>
    tpu.vector_store %arg10[%c0_42, %c0_43], %130 {strides = array<i32>} : memref<32x320xf32, #tpu.memory_space<vmem>>, vector<32x320xf32>,
    return
  }
  func.func @transform_0(%arg0: i32) -> (i32, i32) {
    %c0_i32 = arith.constant 0 : i32
    %c0_i32_0 = arith.constant 0 : i32
    return %arg0, %c0_i32 : i32, i32
  }
  func.func @transform_1(%arg0: i32) -> (i32, i32) {
    %c0_i32 = arith.constant 0 : i32
    %c0_i32_0 = arith.constant 0 : i32
    %c0_i32_1 = arith.constant 0 : i32
    return %c0_i32, %c0_i32_0 : i32, i32
  }
  func.func @transform_2(%arg0: i32) -> (i32, i32) {
    %c0_i32 = arith.constant 0 : i32
    %c0_i32_0 = arith.constant 0 : i32
    %c0_i32_1 = arith.constant 0 : i32
    return %c0_i32, %c0_i32_0 : i32, i32
  }
  func.func @transform_3(%arg0: i32) -> (i32, i32) {
    %c0_i32 = arith.constant 0 : i32
    %c0_i32_0 = arith.constant 0 : i32
    %c0_i32_1 = arith.constant 0 : i32
    return %c0_i32, %c0_i32_0 : i32, i32
  }
  func.func @transform_4(%arg0: i32) -> (i32, i32) {
    %c0_i32 = arith.constant 0 : i32
    %c0_i32_0 = arith.constant 0 : i32
    %c0_i32_1 = arith.constant 0 : i32
    return %c0_i32, %c0_i32_0 : i32, i32
  }
  func.func @transform_5(%arg0: i32) -> (i32, i32) {
    %c0_i32 = arith.constant 0 : i32
    %c0_i32_0 = arith.constant 0 : i32
    %c0_i32_1 = arith.constant 0 : i32
    return %c0_i32, %c0_i32_0 : i32, i32
  }
  func.func @transform_6(%arg0: i32) -> (i32, i32) {
    %c0_i32 = arith.constant 0 : i32
    %c0_i32_0 = arith.constant 0 : i32
    %c0_i32_1 = arith.constant 0 : i32
    return %c0_i32, %c0_i32_0 : i32, i32
  }
  func.func @transform_7(%arg0: i32) -> (i32, i32) {
    %c0_i32 = arith.constant 0 : i32
    %c0_i32_0 = arith.constant 0 : i32
    %c0_i32_1 = arith.constant 0 : i32
    return %c0_i32, %c0_i32_0 : i32, i32
  }
  func.func @transform_8(%arg0: i32) -> (i32, i32) {
    %c0_i32 = arith.constant 0 : i32
    %c0_i32_0 = arith.constant 0 : i32
    %c0_i32_1 = arith.constant 0 : i32
    return %c0_i32, %c0_i32_0 : i32, i32
  }
  func.func @transform_9(%arg0: i32) -> (i32, i32) {
    %c0_i32 = arith.constant 0 : i32
    %c0_i32_0 = arith.constant 0 : i32
    return %arg0, %c0_i32 : i32, i32
  }
}

</mosaic_0001>

<bundles_post_ra>
// kernel: tpu_custom_call.1
= control target key start
LH: loop header
LB: loop body
LE: loop exit
PB: predicated region body
PF: predicated region fallthrough
CT: control target
= control target key end

     0   :  { %14 = vsyncpa [#allocation3], 0  ;;  %s3383_s0 = inlined_call_operand.vmem [shape: f32[64,4], index: 0, kind: input, shape index: {}]   ;;  %s3384_s1 = inlined_call_operand.vmem [shape: f32[1,4], index: 1, kind: input, shape index: {}]   ;;  %s3385_s2 = inlined_call_operand.vmem [shape: f32[32,320], index: 2, kind: input, shape index: {}]   ;;  %s3386_s3 = inlined_call_operand.vmem [shape: f32[320,192], index: 3, kind: input, shape index: {}]   ;;  %s3387_s4 = inlined_call_operand.vmem [shape: f32[1,192], index: 4, kind: input, shape index: {}]   ;;  %s3388_s5 = inlined_call_operand.vmem [shape: f32[64,320], index: 5, kind: input, shape index: {}]   ;;  %s3389_s6 = inlined_call_operand.vmem [shape: f32[1,320], index: 6, kind: input, shape index: {}]   ;;  %s3390_s7 = inlined_call_operand.vmem [shape: f32[1,320], index: 7, kind: input, shape index: {}]   ;;  %s3391_s8 = inlined_call_operand.vmem [shape: f32[1,320], index: 8, kind: input, shape index: {}]   ;;  %s3392_s9 = inlined_call_operand.hbm [shape: f32[64,320], index: 9, kind: output, shape index: {}]  }
   0x1   :  { %16 = vsyncpa [#allocation3 + $0x1], 0  ;;  %s2245_s30 = smov 0   ;;  %s2247_s10 = smov 0  }
   0x2   :  { %s2249_s11 = smov 0   ;;  %s2251_s12 = smov 0  }
   0x3 LB: > { %s2266_s13 = sadd.s32 4294967295, %s2182_s12   ;;  %s1888_s14 = sadd.s32 4294967294, %s2182_s12   ;;  %s2182_s12 = sphi %s2251_s12, %s3416_s12   ;;  %s2178_s11 = sphi %s2249_s11, %s3415_s11   ;;  %s2174_s10 = sphi %s2247_s10, %s3414_s10   ;;  %s2170_s30 = sphi %s2245_s30, %s3413_s30  }
   0x4   : > { %s2270_s15 = sadd.s32 1, %s2182_s12   ;;  %s223_s16 = sadd.s32 1, %s2178_s11 }
   0x5   : > { %s220_s17 = ssub.s32 %s2182_s12, %s2270_s15  ;;  %p233_p0 = scmp.ne.s32.totalorder %s2178_s11, %s2174_s10 }
   0x6   : > { %p221_p1 = scmp.eq.s32.totalorder %s220_s17, 0  ;;  %p234_p2 = scmp.eq.s32.totalorder %s2266_s13, 1 }
   0x7   : > { %p239_p3 = scmp.ne.s32.totalorder %s2174_s10, %s2170_s30  ;;  %p240_p4 = scmp.eq.s32.totalorder %s1888_s14, 1 }
   0x8   : > { %s2281_s18 = scalar_select %p221_p1, %s2178_s11, %s223_s16  }
   0x9   : > { %p2283_p5 = por %p234_p2, %p233_p0  ;;  %p2287_p6 = por %p240_p4, %p239_p3 }
   0xa   : > { %p1891_p7 = scmp.ge.s32.totalorder %s2182_s12, 1  ;;  %p291_p8 = scmp.lt.s32.totalorder %s2182_s12, 3 }
   0xc   : > { %p292_p9 = pnand %p1891_p7, %p291_p8 }
   0xd   : > { %s1892_s21 = sshll.u32 (!%p292_p9), %s2266_s13, 2  ;;  %s2184_s28 = smov (!%p292_p9), 4  }
   0xe   : > { %295 = sbr.rel (%p292_p9) target bundleno = 1543 (0x607), region = 56  ;;  %p328_p10 = scmp.lt.s32.totalorder (!%p292_p9), %s1892_s21, 7 }
   0xf   : > { %s2185_s29 = smov (!%p292_p9), 8   ;;  %s2186_s14 = smov (!%p292_p9), 12  }
  0x10   : > { %s2187_s16 = smov (!%p292_p9), 16   ;;  %s2188_s17 = smov (!%p292_p9), 20  }
  0x11   : > { %s2190_s22 = smov (!%p292_p9), 28   ;;  %s2192_s23 = smov (!%p292_p9), 64  }
  0x13   : > { %s3418_s21 = smov (!%p328_p10, %s1892_s21), 7  ;;  %v2015_v0 = vld [vmem:[%s3384_s1] ss:$0 sm:$0xff]  ;;  %v554_v62 = vld [vmem:[%s3385_s2 + $0x48] sm:$0xff]  ;;  %v555_v63 = vld [vmem:[%s3385_s2 + $0x50] sm:$0xff]  ;;  %vm510_vm0 = vcmask 31744  }
  0x14   : > { %s1893_s24 = sshll.u32 %s3418_s21, 3  ;;  %s2189_s21 = smov 24   ;;  %582 = vmatpush.msra.mxu0 %v554_v62  ;;  %611 = vmatpush.msra.mxu1 %v555_v63  ;;  %vm515_vm1 = vcmask 64512   ;;  %vm520_vm2 = vcmask 97280   ;;  %vm525_vm3 = vcmask 130048   ;;  %vm530_vm4 = vcmask 162816  }
  0x15   : > { %s2300_s27 = scalar_lea.vmem %s3383_s0, %s1893_s24  ;;  %vm535_vm5 = vcmask 195584   ;;  %vm540_vm6 = vcmask 228352   ;;  %vm557_vm7 = vcmask 261120   ;;  %s2193_s24 = smov 32  }
  0x16   : > { %v334_v1 = vld [vmem:[%s2300_s27] sm:$0xff]  ;;  %v335_v2 = vld [vmem:[%s2300_s27 + $0x8] sm:$0xff]  ;;  %v336_v3 = vld [vmem:[%s2300_s27 + $0x10] sm:$0xff] }
  0x17   : > { %v342_v4 = vmul.f32 %v2015_v0, %v334_v1  ;;  %v343_v5 = vmul.f32 %v2015_v0, %v335_v2  ;;  %v344_v6 = vmul.f32 %v2015_v0, %v336_v3  ;;  %v337_v25 = vld [vmem:[%s2300_s27 + $0x18] sm:$0xff]  ;;  %v551_v1 = vld [vmem:[%s3385_s2 + $0x30] sm:$0xff]  ;;  %v553_v3 = vld [vmem:[%s3385_s2 + $0x40] sm:$0xff] }
  0x18   : > { %v345_v31 = vmul.f32 %v2015_v0, %v337_v25  ;;  %v556_v0 = vld [vmem:[%s3385_s2 + $0x58] sm:$0xff]  ;;  %583 = vmatpush.msra.mxu0 %v551_v1  ;;  %v927_v1 = vld [vmem:[%s3386_s3 + $0xf0] sm:$0xff] }
  0x19   : > { %402 = vrot.lane.b32.xlu0 %v342_v4, %s2184_s28  ;;  %v346_v7 = vmul.f32 2.0, %v342_v4  ;;  %404 = vrot.lane.b32.xlu1 %v343_v5, %s2184_s28  ;;  %v347_v8 = vmul.f32 2.0, %v343_v5  ;;  %v2307_v9 = vmul.f32 2.0, %v344_v6  ;;  %v552_v2 = vld [vmem:[%s3385_s2 + $0x38] sm:$0xff] }
  0x1a   : > { %406 = vrot.lane.b32.xlu2 %v344_v6, %s2184_s28  ;;  %v349_v37 = vmul.f32 2.0, %v345_v31  ;;  %640 = vmatpush.msra.mxu2 %v556_v0 }
  0x1b   : > { %v350_v10 = vmul.f32 %v346_v7, %v342_v4  ;;  %v351_v11 = vmul.f32 %v347_v8, %v343_v5  ;;  %v352_v14 = vmul.f32 %v2307_v9, %v344_v6  ;;  %612 = vmatpush.msra.mxu1 %v552_v2  ;;  %v959_v2 = vld [vmem:[%s3386_s3 + $0x1f0] sm:$0xff]  ;;  %996 = vmatpush.msra.mxu3 %v927_v1 }
  0x1c   : > { %v353_v40 = vmul.f32 %v349_v37, %v345_v31  ;;  %641 = vmatpush.msra.mxu2 %v553_v3  ;;  %v928_v3 = vld [vmem:[%s3386_s3 + $0xf8] sm:$0xff] }
  0x1d   : > { %v1894_v12 = vadd.f32 -1.0, %v350_v10  ;;  %v1895_v13 = vadd.f32 -1.0, %v351_v11  ;;  %v1896_v19 = vadd.f32 -1.0, %v352_v14  ;;  %v545_v10 = vld [vmem:[%s3385_s2] sm:$0xff]  ;;  %v546_v11 = vld [vmem:[%s3385_s2 + $0x8] sm:$0xff] }
  0x1e   : > { %v1897_v44 = vadd.f32 -1.0, %v353_v40 }
  0x1f   : > { %v358_v15 = vmul.f32 %v1894_v12, %v346_v7  ;;  %v359_v16 = vmul.f32 %v1895_v13, %v347_v8  ;;  %v360_v24 = vmul.f32 %v1896_v19, %v2307_v9 }
  0x20   : > { %v361_v47 = vmul.f32 %v1897_v44, %v349_v37 }
  0x21   : > { %418 = vrot.lane.b32.xlu0 %v1894_v12, %s2185_s29  ;;  %v362_v17 = vsub.f32 %v358_v15, %v342_v4  ;;  %v363_v18 = vsub.f32 %v359_v16, %v343_v5  ;;  %v364_v30 = vsub.f32 %v360_v24, %v344_v6  ;;  %v548_v4 = vld [vmem:[%s3385_s2 + $0x18] sm:$0xff]  ;;  %v549_v5 = vld [vmem:[%s3385_s2 + $0x20] sm:$0xff]  ;;  %v550_v6 = vld [vmem:[%s3385_s2 + $0x28] sm:$0xff] }
  0x22   : > { %420 = vrot.lane.b32.xlu2 %v1895_v13, %s2185_s29  ;;  %v365_v49 = vsub.f32 %v361_v47, %v345_v31  ;;  %584 = vmatpush.msra.mxu0 %v548_v4  ;;  %v925_v4 = vld [vmem:[%s3386_s3 + $0xe0] sm:$0xff] }
  0x23   : > { %434 = vrot.lane.b32.xlu1 %v362_v17, %s2186_s14  ;;  %v367_v20 = vmul.f32 %v363_v18, %v347_v8  ;;  %v366_v21 = vmul.f32 %v362_v17, %v346_v7  ;;  %v368_v36 = vmul.f32 %v364_v30, %v2307_v9  ;;  %613 = vmatpush.msra.mxu1 %v549_v5  ;;  %v957_v5 = vld [vmem:[%s3386_s3 + $0x1e0] sm:$0xff] }
  0x24   : > { %v369_v51 = vmul.f32 %v365_v49, %v349_v37  ;;  %642 = vmatpush.msra.mxu2 %v550_v6  ;;  %585 = vmatpush.msra.mxu0 %v545_v10  ;;  %v926_v6 = vld [vmem:[%s3386_s3 + $0xe8] sm:$0xff]  ;;  %v921_v10 = vld [vmem:[%s3386_s3 + $0xc0] sm:$0xff] }
  0x25   : > { %v371_v22 = vsub.f32 %v367_v20, %v1895_v13  ;;  %v370_v23 = vsub.f32 %v366_v21, %v1894_v12  ;;  %v372_v39 = vsub.f32 %v368_v36, %v1896_v19  ;;  %v547_v12 = vld [vmem:[%s3385_s2 + $0x10] sm:$0xff]  ;;  %614 = vmatpush.msra.mxu1 %v546_v11  ;;  %997 = vmatpush.msra.mxu3 %v925_v4  ;;  %v953_v11 = vld [vmem:[%s3386_s3 + $0x1c0] sm:$0xff] }
  0x26   : > { %v373_v53 = vsub.f32 %v369_v51, %v1897_v44  ;;  %643 = vmatpush.msra.mxu2 %v547_v12  ;;  %1025 = vmatpush.msrb.mxu0 %v959_v2  ;;  %v922_v12 = vld [vmem:[%s3386_s3 + $0xc8] sm:$0xff] }
  0x27   : > { %v375_v26 = vmul.f32 %v371_v22, %v347_v8  ;;  %v374_v27 = vmul.f32 %v370_v23, %v346_v7  ;;  %v376_v43 = vmul.f32 %v372_v39, %v2307_v9 }
  0x28   : > { %v377_v55 = vmul.f32 %v373_v53, %v349_v37  ;;  %1083 = vmatpush.msrb.mxu2 %v928_v3  ;;  %1026 = vmatpush.msrb.mxu0 %v957_v5 }
  0x29   : > { %v379_v28 = vsub.f32 %v375_v26, %v363_v18  ;;  %436 = vrot.lane.b32.xlu0 %v363_v18, %s2186_s14  ;;  %v378_v29 = vsub.f32 %v374_v27, %v362_v17  ;;  %v380_v46 = vsub.f32 %v376_v43, %v364_v30 }
  0x2a   : > { %v381_v56 = vsub.f32 %v377_v55, %v365_v49  ;;  %1084 = vmatpush.msrb.mxu2 %v926_v6 }
  0x2b   : > { %450 = vrot.lane.b32.xlu1 %v370_v23, %s2187_s16  ;;  %v383_v32 = vmul.f32 %v379_v28, %v347_v8  ;;  %466 = vrot.lane.b32.xlu2 %v378_v29, %s2188_s17  ;;  %v382_v33 = vmul.f32 %v378_v29, %v346_v7  ;;  %v384_v48 = vmul.f32 %v380_v46, %v2307_v9 }
  0x2c   : > { %v385_v57 = vmul.f32 %v381_v56, %v349_v37 }
  0x2d   : > { %v387_v34 = vsub.f32 %v383_v32, %v371_v22  ;;  %v386_v35 = vsub.f32 %v382_v33, %v370_v23  ;;  %v388_v50 = vsub.f32 %v384_v48, %v372_v39 }
  0x2e   : > { %v389_v58 = vsub.f32 %v385_v57, %v373_v53 }
  0x2f   : > { %v390_v38 = vmul.f32 %v386_v35, %v346_v7  ;;  %v391_v41 = vmul.f32 %v387_v34, %v347_v8  ;;  %v392_v52 = vmul.f32 %v388_v50, %v2307_v9 }
  0x30   : > { %v393_v59 = vmul.f32 %v389_v58, %v349_v37 }
  0x31   : > { %484 = vrot.lane.b32.xlu0 %v387_v34, %s2189_s21  ;;  %v394_v42 = vsub.f32 %v390_v38, %v378_v29  ;;  %v395_v45 = vsub.f32 %v391_v41, %v379_v28  ;;  %v396_v54 = vsub.f32 %v392_v52, %v380_v46 }
  0x32   : > { %v397_v60 = vsub.f32 %v393_v59, %v381_v56 }
  0x33   : > { %452 = vrot.lane.b32.xlu1 %v371_v22, %s2187_s16  ;;  %468 = vrot.lane.b32.xlu2 %v379_v28, %s2188_s17 }
  0x39   : > { %498 = vrot.lane.b32.xlu0 %v394_v42, %s2190_s22 }
  0x3b   : > { %500 = vrot.lane.b32.xlu1 %v395_v45, %s2190_s22  ;;  %482 = vrot.lane.b32.xlu2 %v386_v35, %s2189_s21 }
  0x41   : > { %422 = vrot.lane.b32.xlu0 %v1896_v19, %s2185_s29 }
  0x43   : > { %438 = vrot.lane.b32.xlu1 %v364_v30, %s2186_s14  ;;  %454 = vrot.lane.b32.xlu2 %v372_v39, %s2187_s16 }
  0x49   : > { %470 = vrot.lane.b32.xlu0 %v380_v46, %s2188_s17 }
  0x4b   : > { %486 = vrot.lane.b32.xlu1 %v388_v50, %s2189_s21  ;;  %502 = vrot.lane.b32.xlu2 %v396_v54, %s2190_s22 }
  0x51   : > { %408 = vrot.lane.b32.xlu0 %v345_v31, %s2184_s28  ;;  %s324_s28 = sand.u32 1, %s2174_s10  }
  0x52   : > { %s1810_s25 = scalar_lea.sflag [#allocation3], %s324_s28 }
  0x53   : > { %424 = vrot.lane.b32.xlu1 %v1897_v44, %s2185_s29  ;;  %440 = vrot.lane.b32.xlu2 %v365_v49, %s2186_s14  ;;  %s1963_s29 = smul.u32 96, %s324_s28 }
  0x55   : > { %s3303_s14 = scalar_lea.vmem [#allocation2], %s1963_s29 }
  0x59   : > { %456 = vrot.lane.b32.xlu0 %v373_v53, %s2187_s16  ;;  %s1964_s16 = smul.u32 96, %s2266_s13  ;;  %s2140_s13 = scalar_lea.hbm %s3392_s9, 192 }
  0x5b   : > { %472 = vrot.lane.b32.xlu1 %v381_v56, %s2188_s17  ;;  %488 = vrot.lane.b32.xlu2 %v389_v58, %s2189_s21 }
  0x61   : > { %504 = vrot.lane.b32.xlu0 %v397_v60, %s2190_s22  ;;  %s2191_s22 = smov 96  }
  0x74   : > { %v2342_v61 = vpop.permute.xlu2 %406 }
  0x75   : > { %v513_v39 = vsel %vm510_vm0, 1.0, %v2342_v61 }
  0x7c   : > { %v421_v7 = vpop.permute.xlu2 %420 }
  0x85   : > { %v467_v14 = vpop.permute.xlu2 %466 }
  0x8b   : > { %v403_v8 = vpop.permute.xlu0 %402  ;;  %v405_v9 = vpop.permute.xlu1 %404 }
  0x8c   : > { %v511_v19 = vsel %vm510_vm0, 1.0, %v403_v8  ;;  %v512_v25 = vsel %vm510_vm0, 1.0, %v405_v9  ;;  %v955_v8 = vld [vmem:[%s3386_s3 + $0x1d0] sm:$0xff]  ;;  %v924_v9 = vld [vmem:[%s3386_s3 + $0xd8] sm:$0xff] }
  0x8d   : > { %v469_v18 = vpop.permute.xlu2 %468  ;;  %v517_v28 = vsel %vm515_vm1, %v512_v25, %v421_v7  ;;  %v923_v7 = vld [vmem:[%s3386_s3 + $0xd0] sm:$0xff]  ;;  %1027 = vmatpush.msrb.mxu0 %v955_v8  ;;  %1085 = vmatpush.msrb.mxu2 %v924_v9 }
  0x8e   : > { %998 = vmatpush.msra.mxu3 %v923_v7  ;;  %v911_v25 = vld [vmem:[%s3386_s3 + $0x70] sm:$0xff] }
  0x8f   : > { %1028 = vmatpush.msrb.mxu0 %v953_v11  ;;  %1086 = vmatpush.msrb.mxu2 %v922_v12 }
  0x90   : > { %999 = vmatpush.msra.mxu3 %v921_v10 }
  0x93   : > { %v419_v13 = vpop.permute.xlu0 %418 }
  0x94   : > { %v516_v20 = vsel %vm515_vm1, %v511_v19, %v419_v13  ;;  %v919_v13 = vld [vmem:[%s3386_s3 + $0xb0] sm:$0xff] }
  0x95   : > { %v435_v15 = vpop.permute.xlu1 %434  ;;  %v483_v27 = vpop.permute.xlu2 %482  ;;  %1000 = vmatpush.msra.mxu3 %v919_v13  ;;  %v915_v19 = vld [vmem:[%s3386_s3 + $0x90] sm:$0xff] }
  0x96   : > { %v521_v22 = vsel %vm520_vm2, %v516_v20, %v435_v15  ;;  %v920_v15 = vld [vmem:[%s3386_s3 + $0xb8] sm:$0xff]  ;;  %v947_v20 = vld [vmem:[%s3386_s3 + $0x190] sm:$0xff] }
  0x97   : > { %1087 = vmatpush.msrb.mxu2 %v920_v15 }
  0x9b   : > { %v437_v16 = vpop.permute.xlu0 %436 }
  0x9c   : > { %v522_v31 = vsel %vm520_vm2, %v517_v28, %v437_v16  ;;  %v917_v16 = vld [vmem:[%s3386_s3 + $0xa0] sm:$0xff] }
  0x9d   : > { %v451_v17 = vpop.permute.xlu1 %450  ;;  %v455_v36 = vpop.permute.xlu2 %454  ;;  %1001 = vmatpush.msra.mxu3 %v917_v16  ;;  %v909_v28 = vld [vmem:[%s3386_s3 + $0x60] sm:$0xff] }
  0x9e   : > { %v526_v23 = vsel %vm525_vm3, %v521_v22, %v451_v17  ;;  %v949_v17 = vld [vmem:[%s3386_s3 + $0x1a0] sm:$0xff] }
  0x9f   : > { %v531_v26 = vsel %vm530_vm4, %v526_v23, %v467_v14  ;;  %v951_v14 = vld [vmem:[%s3386_s3 + $0x1b0] sm:$0xff]  ;;  %1002 = vmatpush.msra.mxu3 %v915_v19  ;;  %v913_v22 = vld [vmem:[%s3386_s3 + $0x80] sm:$0xff] }
  0xa0   : > { %v536_v29 = vsel %vm535_vm5, %v531_v26, %v483_v27  ;;  %1029 = vmatpush.msrb.mxu0 %v951_v14  ;;  %v945_v23 = vld [vmem:[%s3386_s3 + $0x180] sm:$0xff]  ;;  %v943_v26 = vld [vmem:[%s3386_s3 + $0x170] sm:$0xff]  ;;  %v912_v27 = vld [vmem:[%s3386_s3 + $0x78] sm:$0xff] }
  0xa1   : > { %1003 = vmatpush.msra.mxu3 %v913_v22 }
  0xa2   : > { %1030 = vmatpush.msrb.mxu0 %v949_v17 }
  0xa3   : > { %v485_v21 = vpop.permute.xlu0 %484  ;;  %1004 = vmatpush.msra.mxu3 %v911_v25 }
  0xa4   : > { %1031 = vmatpush.msrb.mxu0 %v947_v20 }
  0xa5   : > { %v453_v24 = vpop.permute.xlu1 %452  ;;  %v503_v47 = vpop.permute.xlu2 %502  ;;  %1005 = vmatpush.msra.mxu3 %v909_v28 }
  0xa6   : > { %v527_v33 = vsel %vm525_vm3, %v522_v31, %v453_v24  ;;  %v914_v24 = vld [vmem:[%s3386_s3 + $0x88] sm:$0xff]  ;;  %1032 = vmatpush.msrb.mxu0 %v945_v23  ;;  %v907_v31 = vld [vmem:[%s3386_s3 + $0x50] sm:$0xff] }
  0xa7   : > { %v532_v35 = vsel %vm530_vm4, %v527_v33, %v469_v18  ;;  %v918_v18 = vld [vmem:[%s3386_s3 + $0xa8] sm:$0xff]  ;;  %v908_v33 = vld [vmem:[%s3386_s3 + $0x58] sm:$0xff]  ;;  %1006 = vmatpush.msra.mxu3 %v907_v31 }
  0xa8   : > { %v537_v38 = vsel %vm535_vm5, %v532_v35, %v485_v21  ;;  %1088 = vmatpush.msrb.mxu2 %v918_v18  ;;  %v916_v21 = vld [vmem:[%s3386_s3 + $0x98] sm:$0xff]  ;;  %1033 = vmatpush.msrb.mxu0 %v943_v26  ;;  %v905_v35 = vld [vmem:[%s3386_s3 + $0x40] sm:$0xff] }
  0xa9   : > { %1007 = vmatpush.msra.mxu3 %v905_v35 }
  0xaa   : > { %1089 = vmatpush.msrb.mxu2 %v916_v21 }
  0xab   : > { %v499_v30 = vpop.permute.xlu0 %498 }
  0xac   : > { %v541_v32 = vsel %vm540_vm6, %v536_v29, %v499_v30  ;;  %1090 = vmatpush.msrb.mxu2 %v914_v24  ;;  %v941_v29 = vld [vmem:[%s3386_s3 + $0x160] sm:$0xff]  ;;  %v910_v30 = vld [vmem:[%s3386_s3 + $0x68] sm:$0xff] }
  0xad   : > { %v501_v34 = vpop.permute.xlu1 %500  ;;  %1898 = vmatmul.msk.f32.vlgmr.msra.gmra.mxu0 %vm557_vm7, %v541_v32  ;;  %1902 = vmatmul.msk.f32.vlgmr.msra.gmra.mxu1 %vm557_vm7, %v541_v32  ;;  %v441_v53 = vpop.permute.xlu2 %440 }
  0xae   : > { %1906 = vmatmul.msk.f32.vlgmr.msra.gmra.mxu2 %vm557_vm7, %v541_v32  ;;  %v542_v40 = vsel %vm540_vm6, %v537_v38, %v501_v34  ;;  %1034 = vmatpush.msrb.mxu0 %v941_v29  ;;  %v939_v32 = vld [vmem:[%s3386_s3 + $0x150] sm:$0xff]  ;;  %v973_v38 = vld [vmem:[%s3386_s3 + $0x260] sm:$0xff] }
  0xaf   : > { %1091 = vmatpush.msrb.mxu2 %v912_v27  ;;  %v975_v34 = vld [vmem:[%s3386_s3 + $0x270] sm:$0xff] }
  0xb0   : > { %1035 = vmatpush.msrb.mxu0 %v939_v32  ;;  %1062 = vmatpush.msrb.mxu1 %v975_v34 }
  0xb1   : > { %1092 = vmatpush.msrb.mxu2 %v910_v30 }
  0xb2   : > { %1063 = vmatpush.msrb.mxu1 %v973_v38 }
  0xb3   : > { %v423_v37 = vpop.permute.xlu0 %422  ;;  %1093 = vmatpush.msrb.mxu2 %v908_v33 }
  0xb4   : > { %v518_v41 = vsel %vm515_vm1, %v513_v39, %v423_v37  ;;  %v906_v37 = vld [vmem:[%s3386_s3 + $0x48] sm:$0xff]  ;;  %v903_v39 = vld [vmem:[%s3386_s3 + $0x30] sm:$0xff] }
  0xb5   : > { %v439_v42 = vpop.permute.xlu1 %438  ;;  %1899 = vmatmul.msk.f32.gmra.mxu0 %vm557_vm7, %v542_v40  ;;  %1903 = vmatmul.msk.f32.gmra.mxu1 %vm557_vm7, %v542_v40  ;;  %v489_v61 = vpop.permute.xlu2 %488 }
  0xb6   : > { %1907 = vmatmul.msk.f32.gmra.mxu2 %vm557_vm7, %v542_v40  ;;  %v523_v43 = vsel %vm520_vm2, %v518_v41, %v439_v42  ;;  %v935_v40 = vld [vmem:[%s3386_s3 + $0x130] sm:$0xff]  ;;  %1008 = vmatpush.msra.mxu3 %v903_v39  ;;  %v904_v41 = vld [vmem:[%s3386_s3 + $0x38] sm:$0xff] }
  0xb7   : > { %v528_v44 = vsel %vm525_vm3, %v523_v43, %v455_v36  ;;  %v937_v36 = vld [vmem:[%s3386_s3 + $0x140] sm:$0xff]  ;;  %1094 = vmatpush.msrb.mxu2 %v906_v37  ;;  %v971_v42 = vld [vmem:[%s3386_s3 + $0x250] sm:$0xff] }
  0xb8   : > { %1036 = vmatpush.msrb.mxu0 %v937_v36  ;;  %v901_v43 = vld [vmem:[%s3386_s3 + $0x20] sm:$0xff]  ;;  %1064 = vmatpush.msrb.mxu1 %v971_v42 }
  0xb9   : > { %1095 = vmatpush.msrb.mxu2 %v904_v41  ;;  %1009 = vmatpush.msra.mxu3 %v901_v43 }
  0xba   : > { %1037 = vmatpush.msrb.mxu0 %v935_v40 }
  0xbb   : > { %v471_v45 = vpop.permute.xlu0 %470 }
  0xbc   : > { %v533_v46 = vsel %vm530_vm4, %v528_v44, %v471_v45  ;;  %v933_v44 = vld [vmem:[%s3386_s3 + $0x120] sm:$0xff]  ;;  %v902_v45 = vld [vmem:[%s3386_s3 + $0x28] sm:$0xff] }
  0xbd   : > { %v487_v48 = vpop.permute.xlu1 %486  ;;  %1038 = vmatpush.msrb.mxu0 %v933_v44  ;;  %1096 = vmatpush.msrb.mxu2 %v902_v45 }
  0xbe   : > { %v538_v49 = vsel %vm535_vm5, %v533_v46, %v487_v48  ;;  %v969_v46 = vld [vmem:[%s3386_s3 + $0x240] sm:$0xff]  ;;  %v931_v48 = vld [vmem:[%s3386_s3 + $0x110] sm:$0xff] }
  0xbf   : > { %v543_v50 = vsel %vm540_vm6, %v538_v49, %v503_v47  ;;  %v899_v47 = vld [vmem:[%s3386_s3 + $0x10] sm:$0xff]  ;;  %1065 = vmatpush.msrb.mxu1 %v969_v46  ;;  %v900_v49 = vld [vmem:[%s3386_s3 + $0x18] sm:$0xff]  ;;  %1039 = vmatpush.msrb.mxu0 %v931_v48 }
  0xc0   : > { %1900 = vmatmul.msk.f32.gmra.mxu0 %vm557_vm7, %v543_v50  ;;  %1904 = vmatmul.msk.f32.gmra.mxu1 %vm557_vm7, %v543_v50 }
  0xc1   : > { %1908 = vmatmul.msk.f32.gmra.mxu2 %vm557_vm7, %v543_v50  ;;  %1010 = vmatpush.msra.mxu3 %v899_v47 }
  0xc2   : > { %1097 = vmatpush.msrb.mxu2 %v900_v49 }
  0xc3   : > { %v409_v51 = vpop.permute.xlu0 %408 }
  0xc4   : > { %v514_v52 = vsel %vm510_vm0, 1.0, %v409_v51 }
  0xc5   : > { %v425_v54 = vpop.permute.xlu1 %424 }
  0xc6   : > { %v519_v55 = vsel %vm515_vm1, %v514_v52, %v425_v54  ;;  %v967_v52 = vld [vmem:[%s3386_s3 + $0x230] sm:$0xff]  ;;  %v929_v54 = vld [vmem:[%s3386_s3 + $0x100] sm:$0xff]  ;;  %vm983_vm1 = vcmask 523264  }
  0xc7   : > { %v524_v56 = vsel %vm520_vm2, %v519_v55, %v441_v53  ;;  %v897_v53 = vld [vmem:[%s3386_s3] sm:$0xff]  ;;  %1066 = vmatpush.msrb.mxu1 %v967_v52  ;;  %1040 = vmatpush.msrb.mxu0 %v929_v54 }
  0xc8   : > { %1011 = vmatpush.msra.mxu3 %v897_v53 }
  0xcb   : > { %v457_v57 = vpop.permute.xlu0 %456 }
  0xcc   : > { %v529_v58 = vsel %vm525_vm3, %v524_v56, %v457_v57  ;;  %v898_v57 = vld [vmem:[%s3386_s3 + $0x8] sm:$0xff] }
  0xcd   : > { %v473_v59 = vpop.permute.xlu1 %472  ;;  %1098 = vmatpush.msrb.mxu2 %v898_v57 }
  0xce   : > { %v534_v60 = vsel %vm530_vm4, %v529_v58, %v473_v59  ;;  %v965_v58 = vld [vmem:[%s3386_s3 + $0x220] sm:$0xff]  ;;  %v963_v59 = vld [vmem:[%s3386_s3 + $0x210] sm:$0xff] }
  0xcf   : > { %v539_v62 = vsel %vm535_vm5, %v534_v60, %v489_v61  ;;  %1067 = vmatpush.msrb.mxu1 %v965_v58  ;;  %v961_v60 = vld [vmem:[%s3386_s3 + $0x200] sm:$0xff] }
  0xd1   : > { %1068 = vmatpush.msrb.mxu1 %v963_v59 }
  0xd3   : > { %v505_v63 = vpop.permute.xlu0 %504  ;;  %1069 = vmatpush.msrb.mxu1 %v961_v60 }
  0xd4   : > { %v544_v0 = vsel %vm540_vm6, %v539_v62, %v505_v63 }
  0xd5   : > { %1901 = vmatmul.msk.f32.gmra.mxu0 %vm557_vm7, %v544_v0  ;;  %1905 = vmatmul.msk.f32.gmra.mxu1 %vm557_vm7, %v544_v0 }
  0xd6   : > { %1909 = vmatmul.msk.f32.gmra.mxu2 %vm557_vm7, %v544_v0 }
 0x12a   : > { %v2568_v50 = vpop.f32.mrf.mxu0  ;;  %v2570_v51 = vpop.f32.mrf.mxu1 }
 0x12b   : > { %v1910_v55 = vmul.f32 -1.442695, %v2568_v50  ;;  %v1911_v56 = vmul.f32 -1.442695, %v2570_v51 }
 0x12d   : > { %2016 = vpow2.f32 %v1910_v55 }
 0x12e   : > { %2018 = vpow2.f32 %v1911_v56 }
 0x131   : > { %v2595_v61 = vpop.f32.mrf.mxu2 }
 0x132   : > { %v1912_v62 = vmul.f32 -1.442695, %v2595_v61  ;;  %v2598_v63 = vpop.f32.mrf.mxu0  ;;  %v2600_v0 = vpop.f32.mrf.mxu1 }
 0x133   : > { %v2017_v1 = vpop.eup %2016  ;;  %v1913_v2 = vmul.f32 -1.442695, %v2598_v63  ;;  %v1914_v5 = vmul.f32 -1.442695, %v2600_v0 }
 0x134   : > { %v2019_v3 = vpop.eup %2018  ;;  %v2603_v4 = vadd.f32 1.0, %v2017_v1  ;;  %2020 = vpow2.f32 %v1912_v62  ;;  %v960_v1 = vld [vmem:[%s3386_s3 + $0x1f8] sm:$0xff] }
 0x135   : > { %v694_v6 = vadd.f32 1.0, %v2019_v3  ;;  %2022 = vpow2.f32 %v1913_v2  ;;  %1112 = vmatpush.msra.mxu0 %v960_v1  ;;  %1947 = vmatpush.msrb.mxu3 %v960_v1 }
 0x136   : > { %2024 = vrcp.f32 %v2603_v4  ;;  %v714_v14 = vand.u32 2147483647, %v2603_v4  ;;  %v716_v18 = vand.u32 2147483648, %v2603_v4  ;;  %vm710_vm9 = vweird.f32 %v2603_v4 }
 0x137   : > { %2026 = vrcp.f32 %v694_v6  ;;  %vm725_vm8 = vweird.f32 %v694_v6  ;;  %v729_v21 = vand.u32 2147483647, %v694_v6  ;;  %v731_v23 = vand.u32 2147483648, %v694_v6 }
 0x138   : > { %2028 = vpow2.f32 %v1914_v5  ;;  %vm2631_vm10 = vcmp.eq.f32.partialorder %v714_v14, 8.507059e+37  ;;  %v717_v31 = vor.u32 1.1754944e-38, %v716_v18  ;;  %v958_v18 = vld [vmem:[%s3386_s3 + $0x1e8] sm:$0xff] }
 0x139   : > { %v2607_v7 = vpop.f32.mrf.mxu2  ;;  %vm2640_vm12 = vcmp.eq.f32.partialorder %v729_v21, 8.507059e+37  ;;  %v732_v37 = vor.u32 1.1754944e-38, %v731_v23  ;;  %1113 = vmatpush.msra.mxu0 %v958_v18  ;;  %1948 = vmatpush.msrb.mxu3 %v958_v18 }
 0x13a   : > { %v2021_v8 = vpop.eup %2020  ;;  %v1915_v9 = vmul.f32 -1.442695, %v2607_v7 }
 0x13b   : > { %v2023_v10 = vpop.eup %2022  ;;  %v2610_v11 = vadd.f32 1.0, %v2021_v8 }
 0x13c   : > { %v2612_v12 = vpop.eup %2024  ;;  %v2614_v13 = vadd.f32 1.0, %v2023_v10  ;;  %2030 = vpow2.f32 %v1915_v9 }
 0x13d   : > { %v2027_v15 = vpop.eup %2026  ;;  %2032 = vrcp.f32 %v2610_v11  ;;  %v2618_v16 = vpop.f32.mrf.mxu0  ;;  %v706_v27 = vmul.f32 %v2612_v12, %v2603_v4  ;;  %v744_v29 = vand.u32 2147483647, %v2610_v11  ;;  %v746_v30 = vand.u32 2147483648, %v2610_v11 }
 0x13e   : > { %v2620_v17 = vpop.f32.mrf.mxu1  ;;  %v2029_v19 = vpop.eup %2028  ;;  %v721_v20 = vmul.f32 %v2027_v15, %v694_v6  ;;  %v1916_v22 = vmul.f32 -1.442695, %v2618_v16  ;;  %2034 = vrcp.f32 %v2614_v13  ;;  %vm726_vm11 = vweird.f32 %v2027_v15 }
 0x13f   : > { %v2626_v24 = vadd.f32 1.0, %v2029_v19  ;;  %v1917_v25 = vmul.f32 -1.442695, %v2620_v17  ;;  %v707_v34 = vsub.f32 1.0, %v706_v27  ;;  %vm740_vm13 = vweird.f32 %v2610_v11  ;;  %vm727_vm15 = vmor %vm725_vm8, %vm726_vm11 }
 0x140   : > { %v722_v26 = vsub.f32 1.0, %v721_v20  ;;  %2036 = vpow2.f32 %v1916_v22  ;;  %vm711_vm14 = vweird.f32 %v2612_v12  ;;  %vm2656_vm0 = vcmp.eq.f32.partialorder %v744_v29, 8.507059e+37 }
 0x141   : > { %2038 = vrcp.f32 %v2626_v24  ;;  %v708_v42 = vmul.f32 %v2612_v12, %v707_v34  ;;  %v747_v45 = vor.u32 1.1754944e-38, %v746_v30  ;;  %v759_v46 = vand.u32 2147483647, %v2614_v13  ;;  %vm712_vm3 = vmor %vm710_vm9, %vm711_vm14 }
 0x142   : > { %v2031_v32 = vpop.eup %2030  ;;  %v723_v33 = vmul.f32 %v2027_v15, %v722_v26  ;;  %2040 = vpow2.f32 %v1917_v25  ;;  %vm755_vm4 = vweird.f32 %v2614_v13  ;;  %v761_v57 = vand.u32 2147483648, %v2614_v13  ;;  %v956_v25 = vld [vmem:[%s3386_s3 + $0x1d8] sm:$0xff] }
 0x143   : > { %v2638_v35 = vpop.eup %2032  ;;  %v2645_v38 = vadd.f32 1.0, %v2031_v32  ;;  %v709_v53 = vadd.f32 %v2612_v12, %v708_v42  ;;  %vm770_vm5 = vweird.f32 %v2626_v24  ;;  %vm2696_vm6 = vcmp.eq.f32.partialorder %v759_v46, 8.507059e+37  ;;  %1114 = vmatpush.msra.mxu0 %v956_v25  ;;  %1949 = vmatpush.msrb.mxu3 %v956_v25  ;;  %v952_v42 = vld [vmem:[%s3386_s3 + $0x1b8] sm:$0xff] }
 0x144   : > { %v724_v39 = vadd.f32 %v2027_v15, %v723_v33  ;;  %v736_v40 = vmul.f32 %v2638_v35, %v2610_v11  ;;  %v2649_v41 = vpop.f32.mrf.mxu2  ;;  %v2653_v43 = vpop.eup %2034  ;;  %vm741_vm2 = vweird.f32 %v2638_v35  ;;  %v774_v9 = vand.u32 2147483647, %v2626_v24 }
 0x145   : > { %2042 = vrcp.f32 %v2645_v38  ;;  %v1918_v52 = vmul.f32 -1.442695, %v2649_v41  ;;  %v713_v62 = vsel %vm712_vm3, %v2612_v12, %v709_v53  ;;  %vm742_vm8 = vmor %vm740_vm13, %vm741_vm2  ;;  %v791_v12 = vand.u32 2147483648, %v2645_v38 }
 0x146   : > { %v2037_v47 = vpop.eup %2036  ;;  %v728_v48 = vsel %vm727_vm15, %v2027_v15, %v724_v39  ;;  %v737_v49 = vsub.f32 1.0, %v736_v40  ;;  %v718_v3 = vsel %vm2631_vm10, %v717_v31, %v713_v62  ;;  %v762_v15 = vor.u32 1.1754944e-38, %v761_v57 }
 0x147   : > { %v2664_v54 = vpop.eup %2038  ;;  %v733_v55 = vsel %vm2640_vm12, %v732_v37, %v728_v48  ;;  %v2669_v56 = vadd.f32 1.0, %v2037_v47  ;;  %2044 = vpow2.f32 %v1918_v52  ;;  %v885_v5 = vmul.f32 %v718_v3, %v2568_v50 }
 0x148   : > { %v2041_v58 = vpop.eup %2040  ;;  %v2678_v59 = vmul.f32 %v733_v55, %v2570_v51  ;;  %v738_v60 = vmul.f32 %v2638_v35, %v737_v49  ;;  %v751_v51 = vmul.f32 %v2653_v43, %v2614_v13  ;;  %v766_v8 = vmul.f32 %v2664_v54, %v2626_v24  ;;  %v950_v55 = vld [vmem:[%s3386_s3 + $0x1a8] sm:$0xff] }
 0x149   : > { %2046 = vrcp.f32 %v2669_v56  ;;  %v2687_v2 = vadd.f32 1.0, %v2041_v58  ;;  %v789_v50 = vand.u32 2147483647, %v2645_v38  ;;  %1012 = vmatmul.f32.vlgmr.msra.gmra.mxu3 %v885_v5  ;;  %1099 = vmatmul.f32.vlgmr.msrb.gmra.mxu2 %v885_v5  ;;  %vm756_vm9 = vweird.f32 %v2653_v43 }
 0x14a   : > { %v739_v4 = vadd.f32 %v2638_v35, %v738_v60  ;;  %1041 = vmatmul.f32.vlgmr.msrb.gmra.mxu0 %v2678_v59  ;;  %v752_v14 = vsub.f32 1.0, %v751_v51  ;;  %v767_v11 = vsub.f32 1.0, %v766_v8  ;;  %v776_v23 = vand.u32 2147483648, %v2626_v24  ;;  %vm2752_vm14 = vmor %vm755_vm4, %vm756_vm9 }
 0x14b   : > { %v2703_v10 = vpop.eup %2042  ;;  %2048 = vrcp.f32 %v2687_v2  ;;  %vm771_vm10 = vweird.f32 %v2664_v54  ;;  %vm785_vm11 = vweird.f32 %v2645_v38  ;;  %vm2734_vm12 = vcmp.eq.f32.partialorder %v789_v50, 8.507059e+37 }
 0x14c   : > { %v743_v19 = vsel %vm742_vm8, %v2638_v35, %v739_v4  ;;  %v781_v20 = vmul.f32 %v2703_v10, %v2645_v38  ;;  %v753_v22 = vmul.f32 %v2653_v43, %v752_v14  ;;  %v768_v29 = vmul.f32 %v2664_v54, %v767_v11  ;;  %vm2764_vm15 = vmor %vm770_vm5, %vm771_vm10  ;;  %v946_v4 = vld [vmem:[%s3386_s3 + $0x188] sm:$0xff] }
 0x14d   : > { %v748_v21 = vsel %vm2656_vm0, %v747_v45, %v743_v19  ;;  %v2045_v26 = vpop.eup %2044  ;;  %vm786_vm13 = vweird.f32 %v2703_v10  ;;  %v792_v39 = vor.u32 1.1754944e-38, %v791_v12  ;;  %vm775_vm0 = vcmp.eq.f32.partialorder %v774_v9, 8.507059e+37  ;;  %v942_v11 = vld [vmem:[%s3386_s3 + $0x168] sm:$0xff] }
 0x14e   : > { %v2727_v27 = vmul.f32 %v748_v21, %v2595_v61  ;;  %v782_v28 = vsub.f32 1.0, %v781_v20  ;;  %v2738_v32 = vadd.f32 1.0, %v2045_v26  ;;  %v754_v33 = vadd.f32 %v2653_v43, %v753_v22  ;;  %v954_v61 = vld [vmem:[%s3386_s3 + $0x1c8] sm:$0xff]  ;;  %vm787_vm2 = vmor %vm785_vm11, %vm786_vm13 }
 0x14f   : > { %v2731_v30 = vpop.eup %2046  ;;  %v769_v36 = vadd.f32 %v2664_v54, %v768_v29  ;;  %v777_v13 = vor.u32 1.1754944e-38, %v776_v23  ;;  %1115 = vmatpush.msra.mxu0 %v954_v61  ;;  %1950 = vmatpush.msrb.mxu3 %v954_v61  ;;  %v804_v53 = vand.u32 2147483647, %v2669_v56  ;;  %vm800_vm4 = vweird.f32 %v2669_v56 }
 0x150   : > { %v783_v34 = vmul.f32 %v2703_v10, %v782_v28  ;;  %1922 = vmatmul.msk.f32.vlgmr.msrb.gmra.mxu1 %vm983_vm1, %v2727_v27  ;;  %v796_v37 = vmul.f32 %v2731_v30, %v2669_v56  ;;  %2050 = vrcp.f32 %v2738_v32  ;;  %v758_v45 = vsel %vm2752_vm14, %v2653_v43, %v754_v33 }
 0x151   : > { %v773_v24 = vsel %vm2764_vm15, %v2664_v54, %v769_v36  ;;  %v2782_v49 = vpop.eup %2048  ;;  %v763_v52 = vsel %vm2696_vm6, %v762_v15, %v758_v45  ;;  %v806_v54 = vand.u32 2147483648, %v2669_v56  ;;  %1116 = vmatpush.msra.mxu0 %v952_v42  ;;  %1951 = vmatpush.msrb.mxu3 %v952_v42  ;;  %vm801_vm3 = vweird.f32 %v2731_v30  ;;  %v936_v42 = vld [vmem:[%s3386_s3 + $0x138] sm:$0xff] }
 0x152   : > { %v784_v44 = vadd.f32 %v2703_v10, %v783_v34  ;;  %v2778_v46 = vpop.f32.mrf.mxu0  ;;  %v2780_v47 = vpop.f32.mrf.mxu1  ;;  %v797_v48 = vsub.f32 1.0, %v796_v37  ;;  %v778_v43 = vsel %vm775_vm0, %v777_v13, %v773_v24  ;;  %v888_v58 = vmul.f32 %v763_v52, %v2598_v63  ;;  %v948_v63 = vld [vmem:[%s3386_s3 + $0x198] sm:$0xff]  ;;  %vm802_vm5 = vmor %vm800_vm4, %vm801_vm3  ;;  %v938_v37 = vld [vmem:[%s3386_s3 + $0x148] sm:$0xff] }
 0x153   : > { %v2798_v38 = vmul.f32 %v778_v43, %v2600_v0  ;;  %v1919_v60 = vmul.f32 -1.442695, %v2778_v46  ;;  %v1920_v1 = vmul.f32 -1.442695, %v2780_v47  ;;  %1117 = vmatpush.msra.mxu0 %v950_v55  ;;  %1952 = vmatpush.msrb.mxu3 %v950_v55  ;;  %v811_v51 = vmul.f32 %v2782_v49, %v2687_v2  ;;  %v930_v55 = vld [vmem:[%s3386_s3 + $0x108] sm:$0xff] }
 0x154   : > { %v788_v57 = vsel %vm787_vm2, %v2703_v10, %v784_v44  ;;  %v798_v3 = vmul.f32 %v2731_v30, %v797_v48  ;;  %1015 = vmatmul.f32.gmra.mxu3 %v888_v58  ;;  %1102 = vmatmul.f32.gmra.mxu2 %v888_v58  ;;  %vm805_vm6 = vcmp.eq.f32.partialorder %v804_v53, 8.507059e+37  ;;  %v807_v8 = vor.u32 1.1754944e-38, %v806_v54  ;;  %v944_v10 = vld [vmem:[%s3386_s3 + $0x178] sm:$0xff] }
 0x155   : > { %v793_v62 = vsel %vm2734_vm12, %v792_v39, %v788_v57  ;;  %1044 = vmatmul.f32.gmra.mxu0 %v2798_v38  ;;  %2052 = vpow2.f32 %v1919_v60  ;;  %v812_v9 = vsub.f32 1.0, %v811_v51  ;;  %1953 = vmatpush.msrb.mxu3 %v948_v63  ;;  %vm816_vm8 = vweird.f32 %v2782_v49  ;;  %v932_v48 = vld [vmem:[%s3386_s3 + $0x118] sm:$0xff] }
 0x156   : > { %v2810_v0 = vmul.f32 %v793_v62, %v2607_v7  ;;  %v2818_v5 = vpop.eup %2050  ;;  %2054 = vpow2.f32 %v1920_v1  ;;  %v799_v6 = vadd.f32 %v2731_v30, %v798_v3  ;;  %1118 = vmatpush.msra.mxu0 %v948_v63  ;;  %v819_v12 = vand.u32 2147483647, %v2687_v2  ;;  %v976_v60 = vld [vmem:[%s3386_s3 + $0x278] sm:$0xff] }
 0x157   : > { %v826_v7 = vmul.f32 %v2818_v5, %v2738_v32  ;;  %v821_v14 = vand.u32 2147483648, %v2687_v2  ;;  %v813_v20 = vmul.f32 %v2782_v49, %v812_v9  ;;  %1954 = vmatpush.msrb.mxu3 %v946_v4  ;;  %v834_v21 = vand.u32 2147483647, %v2738_v32 }
 0x158   : > { %1923 = vmatmul.msk.f32.gmra.mxu1 %vm983_vm1, %v2810_v0  ;;  %v803_v56 = vsel %vm802_vm5, %v2731_v30, %v799_v6  ;;  %1119 = vmatpush.msra.mxu0 %v946_v4  ;;  %v836_v22 = vand.u32 2147483648, %v2738_v32  ;;  %vm815_vm9 = vweird.f32 %v2687_v2  ;;  %vm831_vm10 = vweird.f32 %v2818_v5  ;;  %v940_v2 = vld [vmem:[%s3386_s3 + $0x158] sm:$0xff]  ;;  %v974_v4 = vld [vmem:[%s3386_s3 + $0x268] sm:$0xff] }
 0x159   : > { %v2831_v50 = vpop.f32.mrf.mxu2  ;;  %v827_v15 = vsub.f32 1.0, %v826_v7  ;;  %v808_v19 = vsel %vm805_vm6, %v807_v8, %v803_v56  ;;  %v814_v28 = vadd.f32 %v2782_v49, %v813_v20  ;;  %1955 = vmatpush.msrb.mxu3 %v944_v10  ;;  %vm830_vm11 = vweird.f32 %v2738_v32  ;;  %vm817_vm12 = vmor %vm815_vm9, %vm816_vm8  ;;  %v972_v56 = vld [vmem:[%s3386_s3 + $0x258] sm:$0xff] }
 0x15a   : > { %v1921_v18 = vmul.f32 -1.442695, %v2831_v50  ;;  %v891_v23 = vmul.f32 %v808_v19, %v2618_v16  ;;  %1120 = vmatpush.msra.mxu0 %v944_v10  ;;  %v822_v16 = vor.u32 1.1754944e-38, %v821_v14  ;;  %vm820_vm13 = vcmp.eq.f32.partialorder %v819_v12, 8.507059e+37  ;;  %vm832_vm14 = vmor %vm830_vm11, %vm831_vm10 }
 0x15b   : > { %v2053_v25 = vpop.eup %2052  ;;  %v828_v26 = vmul.f32 %v2818_v5, %v827_v15  ;;  %v818_v61 = vsel %vm817_vm12, %v2782_v49, %v814_v28  ;;  %v837_v32 = vor.u32 1.1754944e-38, %v836_v22  ;;  %1956 = vmatpush.msrb.mxu3 %v942_v11  ;;  %vm835_vm15 = vcmp.eq.f32.partialorder %v834_v21, 8.507059e+37 }
 0x15c   : > { %2056 = vpow2.f32 %v1921_v18  ;;  %v2055_v29 = vpop.eup %2054  ;;  %v2850_v30 = vadd.f32 1.0, %v2053_v25  ;;  %1121 = vmatpush.msra.mxu0 %v942_v11  ;;  %1018 = vmatmul.f32.gmra.mxu3 %v891_v23  ;;  %v823_v34 = vsel %vm820_vm13, %v822_v16, %v818_v61  ;;  %v970_v25 = vld [vmem:[%s3386_s3 + $0x248] sm:$0xff]  ;;  %v964_v16 = vld [vmem:[%s3386_s3 + $0x218] sm:$0xff] }
 0x15d   : > { %v829_v31 = vadd.f32 %v2818_v5, %v828_v26  ;;  %v2858_v33 = vadd.f32 1.0, %v2055_v29  ;;  %1105 = vmatmul.f32.gmra.mxu2 %v891_v23  ;;  %v2867_v36 = vmul.f32 %v823_v34, %v2620_v17  ;;  %1957 = vmatpush.msrb.mxu3 %v940_v2  ;;  %v934_v17 = vld [vmem:[%s3386_s3 + $0x128] sm:$0xff] }
 0x15e   : > { %2058 = vrcp.f32 %v2850_v30  ;;  %1122 = vmatpush.msra.mxu0 %v940_v2  ;;  %vm845_vm0 = vweird.f32 %v2850_v30  ;;  %v851_v49 = vand.u32 2147483648, %v2850_v30  ;;  %v849_v53 = vand.u32 2147483647, %v2850_v30  ;;  %v962_v2 = vld [vmem:[%s3386_s3 + $0x208] sm:$0xff] }
 0x15f   : > { %v833_v35 = vsel %vm832_vm14, %v2818_v5, %v829_v31  ;;  %2060 = vrcp.f32 %v2858_v33  ;;  %1047 = vmatmul.f32.gmra.mxu0 %v2867_v36  ;;  %1958 = vmatpush.msrb.mxu3 %v938_v37  ;;  %v866_v54 = vand.u32 2147483648, %v2858_v33  ;;  %vm860_vm3 = vweird.f32 %v2858_v33 }
 0x160   : > { %v838_v39 = vsel %vm835_vm15, %v837_v32, %v833_v35  ;;  %1123 = vmatpush.msra.mxu0 %v938_v37  ;;  %v864_v58 = vand.u32 2147483647, %v2858_v33  ;;  %v852_v63 = vor.u32 1.1754944e-38, %v851_v49  ;;  %vm850_vm6 = vcmp.eq.f32.partialorder %v849_v53, 8.507059e+37 }
 0x161   : > { %v2873_v13 = vmul.f32 %v838_v39, %v2649_v41  ;;  %1959 = vmatpush.msrb.mxu3 %v936_v42  ;;  %v867_v8 = vor.u32 1.1754944e-38, %v866_v54 }
 0x162   : > { %v2057_v40 = vpop.eup %2056  ;;  %1124 = vmatpush.msra.mxu0 %v936_v42  ;;  %vm865_vm10 = vcmp.eq.f32.partialorder %v864_v58, 8.507059e+37 }
 0x163   : > { %v2879_v44 = vadd.f32 1.0, %v2057_v40  ;;  %1924 = vmatmul.msk.f32.gmra.mxu1 %vm983_vm1, %v2873_v13  ;;  %1960 = vmatpush.msrb.mxu3 %v934_v17 }
 0x164   : > { %v2059_v45 = vpop.eup %2058  ;;  %1125 = vmatpush.msra.mxu0 %v934_v17 }
 0x165   : > { %2062 = vrcp.f32 %v2879_v44  ;;  %v2061_v41 = vpop.eup %2060  ;;  %v841_v24 = vmul.f32 %v2059_v45, %v2850_v30  ;;  %vm846_vm2 = vweird.f32 %v2059_v45  ;;  %1961 = vmatpush.msrb.mxu3 %v932_v48  ;;  %vm875_vm9 = vweird.f32 %v2879_v44 }
 0x166   : > { %v856_v52 = vmul.f32 %v2061_v41, %v2858_v33  ;;  %vm861_vm4 = vweird.f32 %v2061_v41  ;;  %1126 = vmatpush.msra.mxu0 %v932_v48  ;;  %vm2906_vm5 = vmor %vm845_vm0, %vm846_vm2  ;;  %v881_v9 = vand.u32 2147483648, %v2879_v44  ;;  %v879_v14 = vand.u32 2147483647, %v2879_v44 }
 0x167   : > { %v842_v43 = vsub.f32 1.0, %v841_v24  ;;  %1962 = vmatpush.msrb.mxu3 %v930_v55  ;;  %vm2917_vm8 = vmor %vm860_vm3, %vm861_vm4 }
 0x168   : > { %v857_v57 = vsub.f32 1.0, %v856_v52  ;;  %1127 = vmatpush.msra.mxu0 %v930_v55  ;;  %v882_v22 = vor.u32 1.1754944e-38, %v881_v9  ;;  %vm880_vm13 = vcmp.eq.f32.partialorder %v879_v14, 8.507059e+37 }
 0x169   : > { %v843_v62 = vmul.f32 %v2059_v45, %v842_v43 }
 0x16a   : > { %v858_v51 = vmul.f32 %v2061_v41, %v857_v57  ;;  %1149 = vmatpush.msrb.mxu0 %v976_v60 }
 0x16b   : > { %v2063_v1 = vpop.eup %2062  ;;  %v844_v6 = vadd.f32 %v2059_v45, %v843_v62 }
 0x16c   : > { %v871_v5 = vmul.f32 %v2063_v1, %v2879_v44  ;;  %v859_v10 = vadd.f32 %v2061_v41, %v858_v51  ;;  %vm876_vm11 = vweird.f32 %v2063_v1  ;;  %1150 = vmatpush.msrb.mxu0 %v974_v4 }
 0x16d   : > { %v848_v15 = vsel %vm2906_vm5, %v2059_v45, %v844_v6  ;;  %vm877_vm12 = vmor %vm875_vm9, %vm876_vm11 }
 0x16e   : > { %v872_v12 = vsub.f32 1.0, %v871_v5  ;;  %v853_v18 = vsel %vm850_vm6, %v852_v63, %v848_v15  ;;  %v863_v19 = vsel %vm2917_vm8, %v2061_v41, %v859_v10  ;;  %1151 = vmatpush.msrb.mxu0 %v972_v56 }
 0x16f   : > { %v894_v11 = vmul.f32 %v853_v18, %v2778_v46  ;;  %v868_v21 = vsel %vm865_vm10, %v867_v8, %v863_v19  ;;  %v968_v46 = vld [vmem:[%s3386_s3 + $0x238] sm:$0xff] }
 0x170   : > { %v873_v20 = vmul.f32 %v2063_v1, %v872_v12  ;;  %v895_v23 = vmul.f32 %v868_v21, %v2780_v47  ;;  %1152 = vmatpush.msrb.mxu0 %v970_v25  ;;  %v966_v47 = vld [vmem:[%s3386_s3 + $0x228] sm:$0xff] }
 0x171   : > { %1021 = vmatmul.f32.gmra.mxu3 %v894_v11  ;;  %1108 = vmatmul.f32.gmra.mxu2 %v894_v11 }
 0x172   : > { %v874_v26 = vadd.f32 %v2063_v1, %v873_v20  ;;  %1050 = vmatmul.f32.gmra.mxu0 %v895_v23 }
 0x173   : > { %1153 = vmatpush.msrb.mxu0 %v968_v46 }
 0x174   : > { %v878_v28 = vsel %vm877_vm12, %v2063_v1, %v874_v26 }
 0x175   : > { %v883_v29 = vsel %vm880_vm13, %v882_v22, %v878_v28  ;;  %1154 = vmatpush.msrb.mxu0 %v966_v47 }
 0x176   : > { %v896_v30 = vmul.f32 %v883_v29, %v2831_v50  ;;  %v2965_v50 = vld [vmem:[%s3387_s4] sm:$0x3] }
 0x177   : > { %1155 = vmatpush.msrb.mxu0 %v964_v16 }
 0x178   : > { %1925 = vmatmul.msk.f32.gmra.mxu1 %vm983_vm1, %v896_v30 }
 0x179   : > { %1134 = vmatmul.f32.vlgmr.msrb.gmra.mxu3 %v2867_v36  ;;  %1156 = vmatpush.msrb.mxu0 %v962_v2 }
 0x17a   : > { %1128 = vmatmul.f32.vlgmr.msra.gmra.mxu0 %v2678_v59  ;;  %v979_v59 = vperm.slane %v2965_v50, 0 }
 0x181   : > { %1137 = vmatmul.f32.gmra.mxu3 %v895_v23 }
 0x182   : > { %1131 = vmatmul.f32.gmra.mxu0 %v2798_v38 }
 0x18a   : > { %1926 = vmatmul.msk.f32.vlgmr.msrb.gmra.mxu0 %vm983_vm1, %v2727_v27 }
 0x192   : > { %1927 = vmatmul.msk.f32.gmra.mxu0 %vm983_vm1, %v2810_v0 }
 0x19a   : > { %1928 = vmatmul.msk.f32.gmra.mxu0 %vm983_vm1, %v2873_v13 }
 0x1a2   : > { %1929 = vmatmul.msk.f32.gmra.mxu0 %vm983_vm1, %v896_v30 }
 0x1c7   : > { %v1042_v33 = vpop.f32.mrf.mxu0 }
 0x1cc   : > { %v1013_v31 = vpop.f32.mrf.mxu3 }
 0x1cd   : > { %v1014_v38 = vadd.f32 %v1013_v31, %v979_v59  ;;  %v1071_v27 = vpop.f32.mrf.mxu1 }
 0x1cf   : > { %v1043_v61 = vadd.f32 %v1042_v33, %v1014_v38 }
 0x1d1   : > { %v2968_v32 = vadd.f32 %v1071_v27, %v1043_v61 }
 0x1d2   : > { %v1045_v35 = vpop.f32.mrf.mxu0 }
 0x1d3   : > { %1314 = vrot.lane.b32.xlu2 %v2968_v32, %s2191_s22  ;;  %1174 = vrot.lane.b32.xlu1 %v2968_v32, %s2192_s23 }
 0x1d5   : > { %v1074_v37 = vpop.f32.mrf.mxu1 }
 0x1d7   : > { %v1016_v0 = vpop.f32.mrf.mxu3 }
 0x1d8   : > { %v1017_v34 = vadd.f32 %v1016_v0, %v979_v59 }
 0x1da   : > { %v1046_v36 = vadd.f32 %v1045_v35, %v1017_v34 }
 0x1db   : > { %1206 = vrot.lane.b32.xlu2 %v2968_v32, %s2193_s24 }
 0x1dc   : > { %v2973_v39 = vadd.f32 %v1074_v37, %v1046_v36  ;;  %v1048_v42 = vpop.f32.mrf.mxu0 }
 0x1de   : > { %1176 = vrot.lane.b32.xlu0 %v2973_v39, %s2192_s23  ;;  %1316 = vrot.lane.b32.xlu1 %v2973_v39, %s2191_s22 }
 0x1df   : > { %v1019_v40 = vpop.f32.mrf.mxu3 }
 0x1e0   : > { %v1020_v13 = vadd.f32 %v1019_v40, %v979_v59  ;;  %v1077_v17 = vpop.f32.mrf.mxu1 }
 0x1e2   : > { %v1049_v44 = vadd.f32 %v1048_v42, %v1020_v13 }
 0x1e3   : > { %1208 = vrot.lane.b32.xlu2 %v2973_v39, %s2193_s24 }
 0x1e4   : > { %v2980_v45 = vadd.f32 %v1077_v17, %v1049_v44 }
 0x1e6   : > { %1318 = vrot.lane.b32.xlu0 %v2980_v45, %s2191_s22 }
 0x1eb   : > { %1178 = vrot.lane.b32.xlu2 %v2980_v45, %s2192_s23 }
 0x1ef   : > { %v1051_v48 = vpop.f32.mrf.mxu0 }
 0x1f4   : > { %v1022_v41 = vpop.f32.mrf.mxu3 }
 0x1f5   : > { %v1023_v24 = vadd.f32 %v1022_v41, %v979_v59  ;;  %v1080_v52 = vpop.f32.mrf.mxu1 }
 0x1f7   : > { %v1052_v49 = vadd.f32 %v1051_v48, %v1023_v24 }
 0x1f9   : > { %v2987_v43 = vadd.f32 %v1080_v52, %v1052_v49  ;;  %v1129_v49 = vpop.f32.mrf.mxu0 }
 0x1fb   : > { %1320 = vrot.lane.b32.xlu2 %v2987_v43, %s2191_s22  ;;  %1180 = vrot.lane.b32.xlu1 %v2987_v43, %s2192_s23  ;;  %s1823_s23 = sshll.u32 %s3303_s14, 4  ;;  %s1824_s23 = int_to_ptr.vmem [resolvable:$true] %s1823_s23 }
 0x22d   : > { %v1315_v53 = vpop.permute.xlu2 %1314 }
 0x22e   : > { %v1326_v54 = vmul.f32 %v1315_v53, %v2968_v32 }
 0x230   : > { %1334 = vrot.lane.b32.xlu0 %v1326_v54, %s2191_s22 }
 0x235   : > { %v1207_v55 = vpop.permute.xlu2 %1206 }
 0x236   : > { %v1218_v21 = vmul.f32 %v1207_v55, %v2968_v32 }
 0x238   : > { %v1222_v22 = vsel %vm557_vm7, %v1218_v21, 0.0 }
 0x23d   : > { %v1209_v57 = vpop.permute.xlu2 %1208 }
 0x23e   : > { %v1219_v26 = vmul.f32 %v1209_v57, %v2973_v39 }
 0x240   : > { %v1225_v46 = vsel %vm557_vm7, %v1219_v26, 0.0 }
 0x245   : > { %v1175_v58 = vpop.permute.xlu1 %1174  ;;  %v1179_v62 = vpop.permute.xlu2 %1178 }
 0x246   : > { %v1186_v60 = vmul.f32 %v1175_v58, %v2968_v32  ;;  %v1188_v7 = vmul.f32 %v1179_v62, %v2980_v45 }
 0x248   : > { %1366 = vrot.lane.b32.xlu1 %v1186_v60, %s2191_s22  ;;  %v1196_v28 = vsel %vm557_vm7, %v1188_v7, 0.0  ;;  %v1190_v29 = vsel %vm557_vm7, %v1186_v60, 0.0 }
 0x250   : > { %v1177_v1 = vpop.permute.xlu0 %1176  ;;  %v1317_v3 = vpop.permute.xlu1 %1316 }
 0x251   : > { %v1187_v63 = vmul.f32 %v1177_v1, %v2973_v39  ;;  %v1327_v51 = vmul.f32 %v1317_v3, %v2973_v39 }
 0x253   : > { %1368 = vrot.lane.b32.xlu0 %v1187_v63, %s2191_s22  ;;  %1336 = vrot.lane.b32.xlu2 %v1327_v51, %s2191_s22  ;;  %v1193_v47 = vsel %vm557_vm7, %v1187_v63, 0.0  ;;  %v1132_v51 = vpop.f32.mrf.mxu0 }
 0x255   : > { %v1321_v4 = vpop.permute.xlu2 %1320 }
 0x256   : > { %v1329_v5 = vmul.f32 %v1321_v4, %v2987_v43 }
 0x258   : > { %v1319_v6 = vpop.permute.xlu0 %1318 }
 0x259   : > { %v1328_v8 = vmul.f32 %v1319_v6, %v2980_v45 }
 0x25b   : > { %1370 = vrot.lane.b32.xlu2 %v1188_v7, %s2191_s22  ;;  %1340 = vrot.lane.b32.xlu0 %v1329_v5, %s2191_s22  ;;  %v1100_v5 = vpop.f32.mrf.mxu2 }
 0x25c   : > { %1338 = vrot.lane.b32.xlu1 %v1328_v8, %s2191_s22  ;;  %v1158_v8 = vpop.f32.mrf.mxu0 }
 0x26d   : > { %v1181_v9 = vpop.permute.xlu1 %1180 }
 0x26e   : > { %v3007_v10 = vmul.f32 %v1181_v9, %v2987_v43 }
 0x270   : > { %1372 = vrot.lane.b32.xlu1 %v3007_v10, %s2191_s22  ;;  %v1199_v21 = vsel %vm557_vm7, %v3007_v10, 0.0 }
 0x2a2   : > { %v1335_v56 = vpop.permute.xlu0 %1334 }
 0x2a3   : > { %v1346_v12 = vsel %vm557_vm7, %v1335_v56, 0.0  ;;  %v1103_v56 = vpop.f32.mrf.mxu2 }
 0x2a4   : > { %1347 = vadd.xlane.f32.xlu0 %v1346_v12 }
 0x2ad   : > { %v1337_v14 = vpop.permute.xlu2 %1336 }
 0x2ae   : > { %v1349_v15 = vsel %vm557_vm7, %v1337_v14, 0.0  ;;  %v1161_v14 = vpop.f32.mrf.mxu0 }
 0x2af   : > { %1350 = vadd.xlane.f32.xlu2 %v1349_v15 }
 0x2b5   : > { %v1371_v59 = vpop.permute.xlu2 %1370 }
 0x2b6   : > { %v1384_v6 = vsel %vm557_vm7, %v1371_v59, 0.0 }
 0x2ba   : > { %v1367_v18 = vpop.permute.xlu1 %1366 }
 0x2bb   : > { %v1378_v19 = vsel %vm557_vm7, %v1367_v18, 0.0 }
 0x2bc   : > { %1379 = vadd.xlane.f32.xlu1 %v1378_v19 }
 0x2c5   : > { %v1369_v20 = vpop.permute.xlu0 %1368 }
 0x2c6   : > { %v1381_v11 = vsel %vm557_vm7, %v1369_v20, 0.0 }
 0x2c7   : > { %1382 = vadd.xlane.f32.xlu0 %v1381_v11 }
 0x2cd   : > { %v1341_v30 = vpop.permute.xlu0 %1340 }
 0x2ce   : > { %v1339_v23 = vpop.permute.xlu1 %1338  ;;  %v1355_v9 = vsel %vm557_vm7, %v1341_v30, 0.0 }
 0x2cf   : > { %1223 = vadd.xlane.f32.xlu0 %v1222_v22  ;;  %v1352_v25 = vsel %vm557_vm7, %v1339_v23, 0.0 }
 0x2d0   : > { %1353 = vadd.xlane.f32.xlu2 %v1352_v25 }
 0x2d5   : > { %1210 = vrot.lane.b32.xlu1 %v2980_v45, %s2193_s24 }
 0x2d7   : > { %1226 = vadd.xlane.f32.xlu0 %v1225_v46 }
 0x2df   : > { %1197 = vadd.xlane.f32.xlu0 %v1196_v28 }
 0x2e2   : > { %v1373_v16 = vpop.permute.xlu1 %1372 }
 0x2e3   : > { %v1387_v19 = vsel %vm557_vm7, %v1373_v16, 0.0 }
 0x2e8   : > { %1212 = vrot.lane.b32.xlu2 %v2987_v43, %s2193_s24 }
 0x2ff   : > { %1191 = vadd.xlane.f32.xlu1 %v1190_v29 }
 0x311   : > { %1194 = vadd.xlane.f32.xlu2 %v1193_v47 }
 0x317   : > { %v1348_v2 = vpop.xlane.xlu0 %1347 }
 0x318   : > { %v1358_v38 = vmul.f32 0.17677669, %v1348_v2 }
 0x322   : > { %v1351_v35 = vpop.xlane.xlu2 %1350 }
 0x323   : > { %v1359_v37 = vmul.f32 0.17677669, %v1351_v35 }
 0x32f   : > { %v1380_v31 = vpop.xlane.xlu1 %1379 }
 0x330   : > { %v1390_v33 = vmul.f32 0.17677669, %v1380_v31 }
 0x332   : > { %v1394_v61 = vmax.f32 %v1358_v38, %v1390_v33 }
 0x334   : > { %v1398_v27 = vsub.f32 %v1358_v38, %v1394_v61  ;;  %v1410_v32 = vsub.f32 %v1390_v33, %v1394_v61 }
 0x336   : > { %v1402_v0 = vmul.f32 1.442695, %v1398_v27  ;;  %v1414_v34 = vmul.f32 1.442695, %v1410_v32 }
 0x338   : > { %2064 = vpow2.f32 %v1402_v0 }
 0x339   : > { %2066 = vpow2.f32 %v1414_v34 }
 0x33a   : > { %v1383_v36 = vpop.xlane.xlu0 %1382 }
 0x33b   : > { %v1391_v39 = vmul.f32 0.17677669, %v1383_v36 }
 0x33d   : > { %v1395_v40 = vmax.f32 %v1359_v37, %v1391_v39 }
 0x33e   : > { %v2065_v13 = vpop.eup %2064 }
 0x33f   : > { %v1399_v42 = vsub.f32 %v1359_v37, %v1395_v40  ;;  %v1411_v44 = vsub.f32 %v1391_v39, %v1395_v40  ;;  %v2067_v17 = vpop.eup %2066 }
 0x340   : > { %v1422_v41 = vadd.f32 %v2067_v17, %v2065_v13 }
 0x341   : > { %v1404_v24 = vmul.f32 1.442695, %v1399_v42  ;;  %v1416_v48 = vmul.f32 1.442695, %v1411_v44 }
 0x342   : > { %2068 = vrcp.f32 %v1422_v41 }
 0x343   : > { %v3027_v52 = vpop.xlane.xlu2 %1353  ;;  %2070 = vpow2.f32 %v1404_v24 }
 0x344   : > { %2072 = vpow2.f32 %v1416_v48 }
 0x347   : > { %v1211_v53 = vpop.permute.xlu1 %1210 }
 0x348   : > { %v2069_v54 = vpop.eup %2068  ;;  %v1220_v55 = vmul.f32 %v1211_v53, %v2980_v45 }
 0x349   : > { %v2071_v57 = vpop.eup %2070  ;;  %v3030_v58 = vmul.f32 %v2069_v54, %v2065_v13  ;;  %v1442_v2 = vmul.f32 %v2069_v54, %v2067_v17 }
 0x34a   : > { %v2073_v60 = vpop.eup %2072  ;;  %v1228_v1 = vsel %vm557_vm7, %v1220_v55, 0.0 }
 0x34b   : > { %v1213_v62 = vpop.permute.xlu2 %1212  ;;  %v1423_v3 = vadd.f32 %v2073_v60, %v2071_v57  ;;  %1229 = vadd.xlane.f32.xlu0 %v1228_v1 }
 0x34c   : > { %v1221_v63 = vmul.f32 %v1213_v62, %v2987_v43  ;;  %v3040_v43 = vperm.slane %v2965_v50, 1  ;;  %v1224_v50 = vpop.xlane.xlu0 %1223 }
 0x34d   : > { %2074 = vrcp.f32 %v1423_v3  ;;  %v1234_v23 = vmul.f32 0.17677669, %v1224_v50 }
 0x34e   : > { %v1231_v4 = vsel %vm557_vm7, %v1221_v63, 0.0  ;;  %v1104_v12 = vadd.f32 %v1103_v56, %v3040_v43  ;;  %v1101_v46 = vadd.f32 %v1100_v5, %v3040_v43  ;;  %v1360_v63 = vmul.f32 0.17677669, %v3027_v52 }
 0x34f   : > { %1232 = vadd.xlane.f32.xlu1 %v1231_v4 }
 0x350   : > { %v1133_v15 = vadd.f32 %v1132_v51, %v1104_v12  ;;  %v1130_v47 = vadd.f32 %v1129_v49, %v1101_v46 }
 0x352   : > { %v3044_v20 = vadd.f32 %v1161_v14, %v1133_v15  ;;  %v3051_v59 = vadd.f32 %v1158_v8, %v1130_v47  ;;  %v1106_v15 = vpop.f32.mrf.mxu2 }
 0x353   : > { %v2075_v45 = vpop.eup %2074  ;;  %1385 = vadd.xlane.f32.xlu0 %v1384_v6  ;;  %v1107_v52 = vadd.f32 %v1106_v15, %v3040_v43 }
 0x354   : > { %v3036_v7 = vmul.f32 %v2075_v45, %v2071_v57  ;;  %v1443_v18 = vmul.f32 %v2075_v45, %v2073_v60  ;;  %v1446_v10 = vmul.f32 %v1442_v2, %v3051_v59  ;;  %v1227_v38 = vpop.xlane.xlu0 %1226 }
 0x355   : > { %v1235_v32 = vmul.f32 0.17677669, %v1227_v38 }
 0x356   : > { %v1447_v11 = vmul.f32 %v1443_v18, %v3044_v20  ;;  %v1135_v18 = vpop.f32.mrf.mxu3 }
 0x357   : > { %v1136_v50 = vadd.f32 %v1135_v18, %v1107_v52 }
 0x35b   : > { %1356 = vadd.xlane.f32.xlu0 %v1355_v9 }
 0x35c   : > { %v1198_v48 = vpop.xlane.xlu0 %1197 }
 0x35d   : > { %v1204_v53 = vmul.f32 0.17677669, %v1198_v48 }
 0x363   : > { %1388 = vadd.xlane.f32.xlu0 %v1387_v19 }
 0x368   : > { %1456 = vrot.lane.b32.xlu1 %v1447_v11, %s2191_s22  ;;  %v1164_v11 = vpop.f32.mrf.mxu0 }
 0x36b   : > { %1200 = vadd.xlane.f32.xlu0 %v1199_v21 }
 0x372   : > { %v1192_v22 = vpop.xlane.xlu1 %1191 }
 0x373   : > { %v1202_v25 = vmul.f32 0.17677669, %v1192_v22 }
 0x375   : > { %v1238_v26 = vmax.f32 %v1202_v25, %v1234_v23 }
 0x377   : > { %v1242_v28 = vsub.f32 %v1202_v25, %v1238_v26  ;;  %v1254_v29 = vsub.f32 %v1234_v23, %v1238_v26 }
 0x379   : > { %v1246_v30 = vmul.f32 1.442695, %v1242_v28  ;;  %v1258_v16 = vmul.f32 1.442695, %v1254_v29  ;;  %v1165_v28 = vadd.f32 %v1164_v11, %v1136_v50 }
 0x37b   : > { %2076 = vpow2.f32 %v1246_v30 }
 0x37c   : > { %2078 = vpow2.f32 %v1258_v16 }
 0x37f   : > { %1454 = vrot.lane.b32.xlu0 %v1446_v10, %s2191_s22 }
 0x381   : > { %v2077_v31 = vpop.eup %2076 }
 0x382   : > { %v3055_v33 = vpop.eup %2078 }
 0x383   : > { %v1266_v61 = vadd.f32 %v3055_v33, %v2077_v31 }
 0x384   : > { %v1195_v27 = vpop.xlane.xlu2 %1194 }
 0x385   : > { %v1203_v0 = vmul.f32 0.17677669, %v1195_v27  ;;  %2080 = vrcp.f32 %v1266_v61 }
 0x387   : > { %v1239_v34 = vmax.f32 %v1203_v0, %v1235_v32 }
 0x389   : > { %v1243_v35 = vsub.f32 %v1203_v0, %v1239_v34  ;;  %v1255_v36 = vsub.f32 %v1235_v32, %v1239_v34 }
 0x38b   : > { %v1248_v37 = vmul.f32 1.442695, %v1243_v35  ;;  %v1260_v39 = vmul.f32 1.442695, %v1255_v36  ;;  %v3058_v40 = vpop.eup %2080 }
 0x38c   : > { %v3061_v13 = vmul.f32 %v3058_v40, %v2077_v31 }
 0x38d   : > { %2082 = vpow2.f32 %v1248_v37 }
 0x38e   : > { %2084 = vpow2.f32 %v1260_v39 }
 0x393   : > { %v2083_v42 = vpop.eup %2082 }
 0x394   : > { %v3063_v44 = vpop.eup %2084 }
 0x395   : > { %v1267_v17 = vadd.f32 %v3063_v44, %v2083_v42 }
 0x397   : > { %2086 = vrcp.f32 %v1267_v17 }
 0x39d   : > { %v3066_v41 = vpop.eup %2086 }
 0x39e   : > { %v3069_v24 = vmul.f32 %v3066_v41, %v2083_v42 }
 0x3be   : > { %v1230_v49 = vpop.xlane.xlu0 %1229 }
 0x3bf   : > { %v1236_v54 = vmul.f32 0.17677669, %v1230_v49 }
 0x3c1   : > { %v1240_v55 = vmax.f32 %v1204_v53, %v1236_v54 }
 0x3c2   : > { %v1233_v10 = vpop.xlane.xlu1 %1232 }
 0x3c3   : > { %v1244_v57 = vsub.f32 %v1204_v53, %v1240_v55  ;;  %v1256_v60 = vsub.f32 %v1236_v54, %v1240_v55  ;;  %v1237_v32 = vmul.f32 0.17677669, %v1233_v10  ;;  %v1287_v55 = vmul.f32 %v3066_v41, %v3063_v44  ;;  %v1506_v10 = vld [vmem:[%s3388_s5 + $0x80] sm:$0xff] }
 0x3c4   : > { %v1434_v44 = vmul.f32 %v3030_v58, %v3051_v59 }
 0x3c5   : > { %v1250_v62 = vmul.f32 1.442695, %v1244_v57  ;;  %v1262_v1 = vmul.f32 1.442695, %v1256_v60  ;;  %v1109_v60 = vpop.f32.mrf.mxu2 }
 0x3c6   : > { %v1386_v3 = vpop.xlane.xlu0 %1385 }
 0x3c7   : > { %2088 = vpow2.f32 %v1250_v62  ;;  %v1392_v51 = vmul.f32 0.17677669, %v1386_v3  ;;  %v1291_v62 = vmul.f32 %v1287_v55, %v3044_v20  ;;  %v1110_v3 = vadd.f32 %v1109_v60, %v3040_v43 }
 0x3c8   : > { %2090 = vpow2.f32 %v1262_v1  ;;  %v1138_v1 = vpop.f32.mrf.mxu3  ;;  %v1286_v43 = vmul.f32 %v3058_v40, %v3055_v33 }
 0x3c9   : > { %v1396_v4 = vmax.f32 %v1360_v63, %v1392_v51 }
 0x3ca   : > { %v1290_v58 = vmul.f32 %v1286_v43, %v3051_v59 }
 0x3cb   : > { %v1400_v5 = vsub.f32 %v1360_v63, %v1396_v4  ;;  %v1412_v6 = vsub.f32 %v1392_v51, %v1396_v4  ;;  %v1167_v51 = vpop.f32.mrf.mxu0 }
 0x3cd   : > { %v2089_v45 = vpop.eup %2088  ;;  %v1406_v8 = vmul.f32 1.442695, %v1400_v5  ;;  %v1418_v9 = vmul.f32 1.442695, %v1412_v6  ;;  %v1139_v5 = vadd.f32 %v1138_v1, %v1110_v3 }
 0x3ce   : > { %v3072_v56 = vpop.eup %2090  ;;  %v1357_v12 = vpop.xlane.xlu0 %1356 }
 0x3cf   : > { %v1268_v14 = vadd.f32 %v3072_v56, %v2089_v45  ;;  %2092 = vpow2.f32 %v1406_v8  ;;  %v1361_v26 = vmul.f32 0.17677669, %v1357_v12  ;;  %v1168_v8 = vadd.f32 %v1167_v51, %v1139_v5 }
 0x3d0   : > { %2094 = vpow2.f32 %v1418_v9  ;;  %v1279_v51 = vmul.f32 %v3069_v24, %v3044_v20 }
 0x3d1   : > { %2096 = vrcp.f32 %v1268_v14 }
 0x3d5   : > { %v2093_v19 = vpop.eup %2092 }
 0x3d6   : > { %v2095_v21 = vpop.eup %2094  ;;  %v1389_v22 = vpop.xlane.xlu0 %1388 }
 0x3d7   : > { %v2097_v23 = vpop.eup %2096  ;;  %v1424_v25 = vadd.f32 %v2095_v21, %v2093_v19  ;;  %v1393_v46 = vmul.f32 0.17677669, %v1389_v22 }
 0x3d8   : > { %v1276_v29 = vmul.f32 %v2097_v23, %v2089_v45  ;;  %v1288_v52 = vmul.f32 %v2097_v23, %v3072_v56  ;;  %v1511_v56 = vld [vmem:[%s3388_s5 + $0xa8] sm:$0xff]  ;;  %v1512_v23 = vld [vmem:[%s3388_s5 + $0xb0] sm:$0xff] }
 0x3d9   : > { %2098 = vrcp.f32 %v1424_v25  ;;  %v1397_v47 = vmax.f32 %v1361_v26, %v1393_v46  ;;  %v1435_v25 = vmul.f32 %v3036_v7, %v3044_v20  ;;  %1542 = vmatpush.msra.mxu1 %v1511_v56  ;;  %1571 = vmatpush.msra.mxu2 %v1512_v23  ;;  %v1508_v7 = vld [vmem:[%s3388_s5 + $0x90] sm:$0xff] }
 0x3da   : > { %v3076_v30 = vmul.f32 %v1276_v29, %v1165_v28  ;;  %v1457_v22 = vpop.permute.xlu1 %1456  ;;  %v1510_v29 = vld [vmem:[%s3388_s5 + $0xa0] sm:$0xff] }
 0x3db   : > { %v1401_v16 = vsub.f32 %v1361_v26, %v1397_v47  ;;  %v1413_v2 = vsub.f32 %v1393_v46, %v1397_v47  ;;  %v1467_v26 = vadd.f32 %v1457_v22, %v1435_v25  ;;  %v1513_v46 = vld [vmem:[%s3388_s5 + $0xb8] sm:$0xff]  ;;  %1543 = vmatpush.msra.mxu1 %v1508_v7 }
 0x3dc   : > { %1600 = vmatpush.msra.mxu3 %v1513_v46 }
 0x3dd   : > { %v1408_v31 = vmul.f32 1.442695, %v1401_v16  ;;  %v1420_v38 = vmul.f32 1.442695, %v1413_v2  ;;  %v1505_v2 = vld [vmem:[%s3388_s5 + $0x78] sm:$0xff] }
 0x3de   : > { %v1201_v61 = vpop.xlane.xlu0 %1200  ;;  %1601 = vmatpush.msra.mxu3 %v1510_v29  ;;  %1544 = vmatpush.msra.mxu1 %v1505_v2 }
 0x3df   : > { %v2099_v27 = vpop.eup %2098  ;;  %2100 = vpow2.f32 %v1408_v31  ;;  %v1205_v0 = vmul.f32 0.17677669, %v1201_v61  ;;  %v1507_v31 = vld [vmem:[%s3388_s5 + $0x88] sm:$0xff] }
 0x3e0   : > { %2102 = vpow2.f32 %v1420_v38  ;;  %v1444_v34 = vmul.f32 %v2099_v27, %v2095_v21  ;;  %v1432_v35 = vmul.f32 %v2099_v27, %v2093_v19  ;;  %v1292_v21 = vmul.f32 %v1288_v52, %v1165_v28  ;;  %v1502_v38 = vld [vmem:[%s3388_s5 + $0x60] sm:$0xff]  ;;  %v1503_v61 = vld [vmem:[%s3388_s5 + $0x68] sm:$0xff]  ;;  %v1504_v27 = vld [vmem:[%s3388_s5 + $0x70] sm:$0xff]  ;;  %1602 = vmatpush.msra.mxu3 %v1507_v31 }
 0x3e1   : > { %v1241_v36 = vmax.f32 %v1205_v0, %v1237_v32  ;;  %1545 = vmatpush.msra.mxu1 %v1502_v38 }
 0x3e2   : > { %v1448_v37 = vmul.f32 %v1444_v34, %v1165_v28  ;;  %v3078_v39 = vmul.f32 %v1432_v35, %v1165_v28  ;;  %v1509_v28 = vld [vmem:[%s3388_s5 + $0x98] sm:$0xff]  ;;  %1603 = vmatpush.msra.mxu3 %v1504_v27  ;;  %v1496_v35 = vld [vmem:[%s3388_s5 + $0x30] sm:$0xff] }
 0x3e3   : > { %v1245_v42 = vsub.f32 %v1205_v0, %v1241_v36  ;;  %v1257_v17 = vsub.f32 %v1237_v32, %v1241_v36  ;;  %1572 = vmatpush.msra.mxu2 %v1509_v28  ;;  %v1499_v32 = vld [vmem:[%s3388_s5 + $0x48] sm:$0xff]  ;;  %v1500_v0 = vld [vmem:[%s3388_s5 + $0x50] sm:$0xff]  ;;  %v1501_v34 = vld [vmem:[%s3388_s5 + $0x58] sm:$0xff] }
 0x3e4   : > { %1458 = vrot.lane.b32.xlu2 %v1448_v37, %s2191_s22  ;;  %v1497_v36 = vld [vmem:[%s3388_s5 + $0x38] sm:$0xff]  ;;  %1546 = vmatpush.msra.mxu1 %v1499_v32  ;;  %v1498_v37 = vld [vmem:[%s3388_s5 + $0x40] sm:$0xff] }
 0x3e5   : > { %v2101_v48 = vpop.eup %2100  ;;  %v1252_v49 = vmul.f32 1.442695, %v1245_v42  ;;  %v1264_v53 = vmul.f32 1.442695, %v1257_v17  ;;  %1573 = vmatpush.msra.mxu2 %v1506_v10  ;;  %1604 = vmatpush.msra.mxu3 %v1501_v34  ;;  %v1494_v42 = vld [vmem:[%s3388_s5 + $0x20] sm:$0xff]  ;;  %v1495_v17 = vld [vmem:[%s3388_s5 + $0x28] sm:$0xff] }
 0x3e6   : > { %v2103_v54 = vpop.eup %2102  ;;  %1547 = vmatpush.msra.mxu1 %v1496_v35 }
 0x3e7   : > { %v1425_v57 = vadd.f32 %v2103_v54, %v2101_v48  ;;  %2104 = vpow2.f32 %v1252_v49  ;;  %1574 = vmatpush.msra.mxu2 %v1503_v61  ;;  %1605 = vmatpush.msra.mxu3 %v1498_v37  ;;  %v1491_v49 = vld [vmem:[%s3388_s5 + $0x8] sm:$0xff] }
 0x3e8   : > { %2106 = vpow2.f32 %v1264_v53  ;;  %v1492_v53 = vld [vmem:[%s3388_s5 + $0x10] sm:$0xff] }
 0x3e9   : > { %2108 = vrcp.f32 %v1425_v57  ;;  %1575 = vmatpush.msra.mxu2 %v1500_v0  ;;  %1606 = vmatpush.msra.mxu3 %v1495_v17  ;;  %v1278_v57 = vmul.f32 %v3061_v13, %v3051_v59 }
 0x3eb   : > { %1576 = vmatpush.msra.mxu2 %v1497_v36  ;;  %1607 = vmatpush.msra.mxu3 %v1492_v53 }
 0x3ec   : > { %1300 = vrot.lane.b32.xlu2 %v1291_v62, %s2191_s22 }
 0x3ed   : > { %v2105_v63 = vpop.eup %2104  ;;  %1577 = vmatpush.msra.mxu2 %v1494_v42 }
 0x3ee   : > { %v2107_v4 = vpop.eup %2106 }
 0x3ef   : > { %v2109_v6 = vpop.eup %2108  ;;  %v1269_v45 = vadd.f32 %v2107_v4, %v2105_v63  ;;  %1578 = vmatpush.msra.mxu2 %v1491_v49 }
 0x3f0   : > { %v1445_v41 = vmul.f32 %v2109_v6, %v2103_v54  ;;  %v1433_v9 = vmul.f32 %v2109_v6, %v2101_v48  ;;  %v1490_v48 = vld [vmem:[%s3388_s5] sm:$0xff] }
 0x3f1   : > { %2110 = vrcp.f32 %v1269_v45  ;;  %v1455_v12 = vpop.permute.xlu0 %1454 }
 0x3f2   : > { %v1466_v14 = vadd.f32 %v1455_v12, %v1434_v44  ;;  %v1449_v15 = vmul.f32 %v1445_v41, %v1168_v8  ;;  %v3088_v18 = vmul.f32 %v1433_v9, %v1168_v8 }
 0x3f4   : > { %1460 = vrot.lane.b32.xlu0 %v1449_v15, %s2191_s22  ;;  %1474 = vrot.lane.b32.xlu1 %v1466_v14, %s2193_s24 }
 0x3f7   : > { %v2111_v19 = vpop.eup %2110 }
 0x3f8   : > { %v1277_v11 = vmul.f32 %v2111_v19, %v2105_v63  ;;  %v1289_v33 = vmul.f32 %v2111_v19, %v2107_v4 }
 0x3fa   : > { %v3096_v50 = vmul.f32 %v1277_v11, %v1168_v8  ;;  %v1293_v40 = vmul.f32 %v1289_v33, %v1168_v8 }
 0x3fc   : > { %1298 = vrot.lane.b32.xlu0 %v1290_v58, %s2191_s22  ;;  %1302 = vrot.lane.b32.xlu1 %v1292_v21, %s2191_s22 }
 0x404   : > { %1476 = vrot.lane.b32.xlu0 %v1467_v26, %s2193_s24 }
 0x40c   : > { %1304 = vrot.lane.b32.xlu0 %v1293_v40, %s2191_s22 }
 0x43e   : > { %v1459_v47 = vpop.permute.xlu2 %1458 }
 0x43f   : > { %v1468_v16 = vadd.f32 %v1459_v47, %v3078_v39  ;;  %v1493_v39 = vld [vmem:[%s3388_s5 + $0x18] sm:$0xff] }
 0x440   : > { %1548 = vmatpush.msra.mxu1 %v1493_v39 }
 0x441   : > { %1478 = vrot.lane.b32.xlu2 %v1468_v16, %s2193_s24 }
 0x442   : > { %1549 = vmatpush.msra.mxu1 %v1490_v48 }
 0x446   : > { %v1301_v63 = vpop.permute.xlu2 %1300 }
 0x447   : > { %v1311_v5 = vadd.f32 %v1301_v63, %v1279_v51 }
 0x466   : > { %v1461_v54 = vpop.permute.xlu0 %1460  ;;  %v1475_v1 = vpop.permute.xlu1 %1474 }
 0x467   : > { %v1469_v55 = vadd.f32 %v1461_v54, %v3088_v18 }
 0x469   : > { %1480 = vrot.lane.b32.xlu1 %v1469_v55, %s2193_s24  ;;  %s1822_s24 = scalar_lea.hbm %s3392_s9, %s1964_s16 }
 0x46a   : > { %s1825_s22 = sshll.u32 %s1822_s24, 4  ;;  %s1826_s22 = int_to_ptr.hbm [resolvable:$true] %s1825_s22 }
 0x46b   : > { %s2134_s26 = sshra.s32 %s1826_s22, 4  ;;  %s2135_s26 = int_to_ptr.hbm [resolvable:$true] %s2134_s26 }
 0x46c   : > { %s2136_s27 = scalar_lea.hbm %s2135_s26, 96  ;;  %p2141_p0 = scmp.lt.s32.totalorder %s2135_s26, %s3392_s9 }
 0x46d   : > { %p2137_p11 = scmp.ne.s32.totalorder %s2135_s26, %s2136_s27  ;;  %p2142_p1 = scmp.lt.s32.totalorder %s2140_s13, %s2136_s27 }
 0x46e   : > { %v1299_v60 = vpop.permute.xlu0 %1298  ;;  %v1303_v59 = vpop.permute.xlu1 %1302 }
 0x46f   : > { %v1310_v62 = vadd.f32 %v1299_v60, %v1278_v57  ;;  %v1312_v13 = vadd.f32 %v1303_v59, %v3076_v30  ;;  %v1514_v30 = vld [vmem:[%s3389_s6] sm:$0x7]  ;;  %p2138_p12 = pnand %p2137_p11, %p2283_p5  ;;  %p2143_p2 = por %p2142_p1, %p2141_p0 }
 0x470   : > { %v1516_v9 = vperm.slane %v1514_v30, 0  ;;  %v1517_v14 = vperm.slane %v1514_v30, 1  ;;  %v1518_v15 = vperm.slane %v1514_v30, 2 }
 0x471   : > { %v1486_v3 = vsel %vm557_vm7, %v1310_v62, %v1475_v1  ;;  %p2139_p13 = pneg %p2138_p12 }
 0x472   : > { %1930 = vmatmul.msk.f32.vlgmr.msra.gmra.mxu1 %vm983_vm1, %v1486_v3  ;;  %1934 = vmatmul.msk.f32.vlgmr.msra.gmra.mxu2 %vm983_vm1, %v1486_v3 }
 0x473   : > { %1938 = vmatmul.msk.f32.vlgmr.msra.gmra.mxu3 %vm983_vm1, %v1486_v3  ;;  %p2144_p3 = pnand %p2143_p2, %p2139_p13 }
 0x476   : > { %v1477_v4 = vpop.permute.xlu0 %1476 }
 0x477   : > { %v1487_v6 = vsel %vm557_vm7, %v1311_v5, %v1477_v4 }
 0x47a   : > { %1931 = vmatmul.msk.f32.gmra.mxu1 %vm983_vm1, %v1487_v6  ;;  %1935 = vmatmul.msk.f32.gmra.mxu2 %vm983_vm1, %v1487_v6 }
 0x47b   : > { %1939 = vmatmul.msk.f32.gmra.mxu3 %vm983_vm1, %v1487_v6 }
 0x47e   : > { %v1305_v20 = vpop.permute.xlu0 %1304 }
 0x47f   : > { %v1313_v24 = vadd.f32 %v1305_v20, %v3096_v50 }
 0x49b   : > { %v1479_v45 = vpop.permute.xlu2 %1478 }
 0x49c   : > { %v1488_v8 = vsel %vm557_vm7, %v1312_v13, %v1479_v45 }
 0x49d   : > { %1932 = vmatmul.msk.f32.gmra.mxu1 %vm983_vm1, %v1488_v8  ;;  %1936 = vmatmul.msk.f32.gmra.mxu2 %vm983_vm1, %v1488_v8 }
 0x49e   : > { %1940 = vmatmul.msk.f32.gmra.mxu3 %vm983_vm1, %v1488_v8 }
 0x4db   : > { %v1481_v44 = vpop.permute.xlu1 %1480 }
 0x4dc   : > { %v1489_v41 = vsel %vm557_vm7, %v1313_v24, %v1481_v44 }
 0x4dd   : > { %1933 = vmatmul.msk.f32.gmra.mxu1 %vm983_vm1, %v1489_v41  ;;  %1937 = vmatmul.msk.f32.gmra.mxu2 %vm983_vm1, %v1489_v41 }
 0x4de   : > { %1941 = vmatmul.msk.f32.gmra.mxu3 %vm983_vm1, %v1489_v41 }
 0x4ef   : > { %v1551_v12 = vpop.f32.mrf.mxu1 }
 0x4f0   : > { %v3205_v18 = vadd.f32 %v1551_v12, %v1516_v9 }
 0x4f2   : > { %v1645_v58 = vmul.f32 %v3205_v18, %v3205_v18 }
 0x4f5   : > { %v1580_v43 = vpop.f32.mrf.mxu2 }
 0x4f6   : > { %v3207_v52 = vadd.f32 %v1580_v43, %v1517_v14  ;;  %v1609_v19 = vpop.f32.mrf.mxu3 }
 0x4f7   : > { %v3209_v11 = vadd.f32 %v1609_v19, %v1518_v15  ;;  %v1554_v40 = vpop.f32.mrf.mxu1 }
 0x4f8   : > { %v1646_v21 = vmul.f32 %v3207_v52, %v3207_v52  ;;  %v1621_v50 = vadd.f32 %v3207_v52, %v3205_v18  ;;  %v3222_v7 = vadd.f32 %v1554_v40, %v1516_v9 }
 0x4f9   : > { %v1622_v22 = vsel %vm983_vm1, %v3209_v11, 0.0  ;;  %v1647_v25 = vmul.f32 %v3209_v11, %v3209_v11 }
 0x4fa   : > { %v1623_v26 = vadd.f32 %v1622_v22, %v1621_v50  ;;  %v1657_v33 = vadd.f32 %v1646_v21, %v1645_v58  ;;  %v1648_v42 = vmul.f32 %v3222_v7, %v3222_v7 }
 0x4fb   : > { %v1658_v56 = vsel %vm983_vm1, %v1647_v25, 0.0  ;;  %v1757_v25 = vld [vmem:[%s3390_s7] sm:$0x7] }
 0x4fc   : > { %1624 = vadd.xlane.f32.xlu2 %v1623_v26  ;;  %v1659_v23 = vadd.f32 %v1658_v56, %v1657_v33  ;;  %v1777_v33 = vld [vmem:[%s3391_s8] sm:$0x7]  ;;  %v3280_v40 = vperm.slane %v1757_v25, 0  ;;  %v3282_v56 = vperm.slane %v1757_v25, 1 }
 0x4fd   : > { %v1583_v46 = vpop.f32.mrf.mxu2 }
 0x4fe   : > { %v3224_v28 = vadd.f32 %v1583_v46, %v1517_v14  ;;  %v1612_v29 = vpop.f32.mrf.mxu3  ;;  %1660 = vadd.xlane.f32.xlu0 %v1659_v23 }
 0x4ff   : > { %v3226_v47 = vadd.f32 %v1612_v29, %v1518_v15 }
 0x500   : > { %v1626_v16 = vadd.f32 %v3224_v28, %v3222_v7  ;;  %v1649_v36 = vmul.f32 %v3224_v28, %v3224_v28 }
 0x501   : > { %v1627_v2 = vsel %vm983_vm1, %v3226_v47, 0.0  ;;  %v1650_v39 = vmul.f32 %v3226_v47, %v3226_v47 }
 0x502   : > { %v1628_v10 = vadd.f32 %v1627_v2, %v1626_v16  ;;  %v1662_v17 = vadd.f32 %v1649_v36, %v1648_v42  ;;  %v3287_v2 = vperm.slane %v1757_v25, 2 }
 0x503   : > { %v1663_v48 = vsel %vm983_vm1, %v1650_v39, 0.0 }
 0x504   : > { %v1664_v49 = vadd.f32 %v1663_v48, %v1662_v17 }
 0x506   : > { %1629 = vadd.xlane.f32.xlu0 %v1628_v10  ;;  %v3289_v10 = vperm.slane %v1777_v33, 0 }
 0x51a   : > { %v1557_v31 = vpop.f32.mrf.mxu1 }
 0x51b   : > { %v3232_v61 = vadd.f32 %v1557_v31, %v1516_v9  ;;  %v3291_v31 = vperm.slane %v1777_v33, 1 }
 0x51d   : > { %v1651_v8 = vmul.f32 %v3232_v61, %v3232_v61 }
 0x520   : > { %v1586_v38 = vpop.f32.mrf.mxu2 }
 0x521   : > { %v3234_v27 = vadd.f32 %v1586_v38, %v1517_v14  ;;  %v1615_v32 = vpop.f32.mrf.mxu3 }
 0x522   : > { %v3236_v0 = vadd.f32 %v1615_v32, %v1518_v15  ;;  %v3295_v32 = vperm.slane %v1777_v33, 2 }
 0x523   : > { %v1631_v34 = vadd.f32 %v3234_v27, %v3232_v61  ;;  %v1652_v5 = vmul.f32 %v3234_v27, %v3234_v27 }
 0x524   : > { %v1632_v35 = vsel %vm983_vm1, %v3236_v0, 0.0  ;;  %v1653_v45 = vmul.f32 %v3236_v0, %v3236_v0 }
 0x525   : > { %v1633_v37 = vadd.f32 %v1632_v35, %v1631_v34  ;;  %v1667_v24 = vadd.f32 %v1652_v5, %v1651_v8 }
 0x526   : > { %v1668_v44 = vsel %vm983_vm1, %v1653_v45, 0.0 }
 0x527   : > { %1634 = vadd.xlane.f32.xlu1 %v1633_v37  ;;  %v1669_v41 = vadd.f32 %v1668_v44, %v1667_v24 }
 0x52f   : > { %1665 = vadd.xlane.f32.xlu1 %v1664_v49 }
 0x55a   : > { %v1560_v53 = vpop.f32.mrf.mxu1 }
 0x55b   : > { %v3249_v54 = vadd.f32 %v1560_v53, %v1516_v9 }
 0x55d   : > { %v1654_v1 = vmul.f32 %v3249_v54, %v3249_v54 }
 0x560   : > { %v1589_v55 = vpop.f32.mrf.mxu2 }
 0x561   : > { %v3251_v57 = vadd.f32 %v1589_v55, %v1517_v14  ;;  %v1618_v60 = vpop.f32.mrf.mxu3 }
 0x562   : > { %v3253_v62 = vadd.f32 %v1618_v60, %v1518_v15 }
 0x563   : > { %v1655_v3 = vmul.f32 %v3251_v57, %v3251_v57  ;;  %v1636_v63 = vadd.f32 %v3251_v57, %v3249_v54 }
 0x564   : > { %v1637_v51 = vsel %vm983_vm1, %v3253_v62, 0.0  ;;  %v1656_v4 = vmul.f32 %v3253_v62, %v3253_v62 }
 0x565   : > { %v1638_v6 = vadd.f32 %v1637_v51, %v1636_v63  ;;  %v1672_v59 = vadd.f32 %v1655_v3, %v1654_v1 }
 0x566   : > { %v1673_v13 = vsel %vm983_vm1, %v1656_v4, 0.0 }
 0x567   : > { %1639 = vadd.xlane.f32.xlu2 %v1638_v6  ;;  %v1674_v20 = vadd.f32 %v1673_v13, %v1672_v59 }
 0x569   : > { %1675 = vadd.xlane.f32.xlu0 %v1674_v20 }
 0x56f   : > { %v1625_v30 = vpop.xlane.xlu2 %1624  ;;  %1670 = vadd.xlane.f32.xlu2 %v1669_v41 }
 0x570   : > { %v1641_v9 = vmul.f32 0.003125, %v1625_v30 }
 0x571   : > { %v1661_v12 = vpop.xlane.xlu0 %1660 }
 0x572   : > { %v1677_v14 = vmul.f32 0.003125, %v1661_v12  ;;  %v1681_v15 = vmul.f32 %v1641_v9, %v1641_v9  ;;  %v1689_v46 = vsub.f32 %v3205_v18, %v1641_v9  ;;  %v1690_v29 = vsub.f32 %v3207_v52, %v1641_v9 }
 0x573   : > { %v1691_v16 = vsub.f32 %v3209_v11, %v1641_v9 }
 0x574   : > { %v1685_v43 = vsub.f32 %v1677_v14, %v1681_v15 }
 0x576   : > { %v1701_v19 = vadd.f32 1e-05, %v1685_v43 }
 0x578   : > { %2112 = vrsqrt.f32 %v1701_v19  ;;  %vm1711_vm14 = vweird.f32 %v1701_v19 }
 0x579   : > { %v1630_v48 = vpop.xlane.xlu0 %1629 }
 0x57a   : > { %v1642_v49 = vmul.f32 0.003125, %v1630_v48 }
 0x57c   : > { %v1682_v55 = vmul.f32 %v1642_v49, %v1642_v49  ;;  %v1692_v13 = vsub.f32 %v3222_v7, %v1642_v49  ;;  %v1693_v45 = vsub.f32 %v3224_v28, %v1642_v49  ;;  %v1694_v8 = vsub.f32 %v3226_v47, %v1642_v49 }
 0x57e   : > { %v2113_v58 = vpop.eup %2112 }
 0x57f   : > { %v1706_v21 = vmul.f32 %v2113_v58, %v1701_v19  ;;  %vm1712_vm7 = vweird.f32 %v2113_v58 }
 0x580   : > { %vm1713_vm15 = vmor %vm1711_vm14, %vm1712_vm7 }
 0x581   : > { %v1707_v50 = vmul.f32 %v2113_v58, %v1706_v21 }
 0x583   : > { %v1708_v22 = vmul.f32 0.5, %v1707_v50 }
 0x585   : > { %v1709_v26 = vsub.f32 1.5, %v1708_v22 }
 0x587   : > { %v1710_v23 = vmul.f32 %v2113_v58, %v1709_v26 }
 0x589   : > { %v1714_v38 = vsel %vm1713_vm15, %v2113_v58, %v1710_v23 }
 0x58a   : > { %v1745_v34 = vmul.f32 %v1714_v38, %v1689_v46  ;;  %v1746_v35 = vmul.f32 %v1714_v38, %v1690_v29  ;;  %v1747_v36 = vmul.f32 %v1714_v38, %v1691_v16 }
 0x58c   : > { %v1765_v18 = vmul.f32 %v3280_v40, %v1745_v34  ;;  %v1766_v52 = vmul.f32 %v3282_v56, %v1746_v35  ;;  %v1767_v11 = vmul.f32 %v3287_v2, %v1747_v36 }
 0x58e   : > { %v1785_v37 = vadd.f32 %v3289_v10, %v1765_v18  ;;  %v1786_v39 = vadd.f32 %v3291_v31, %v1766_v52  ;;  %v1787_v42 = vadd.f32 %v3295_v32, %v1767_v11 }
 0x590   : > { %1797 = vst [vmem:[%s3303_s14] sm:$0xff] %v1785_v37 }
 0x591   : > { %1798 = vst [vmem:[%s3303_s14 + $0x8] sm:$0xff] %v1786_v39 }
 0x592   : > { %1799 = vst.msk [vmem:[%s3303_s14 + $0x10] sm:$0xff] %vm983_vm1, %v1787_v42 }
 0x59a   : > { %v1635_v17 = vpop.xlane.xlu1 %1634 }
 0x59b   : > { %v1643_v21 = vmul.f32 0.003125, %v1635_v17 }
 0x59d   : > { %v1683_v33 = vmul.f32 %v1643_v21, %v1643_v21 }
 0x5a2   : > { %v1666_v53 = vpop.xlane.xlu1 %1665 }
 0x5a3   : > { %v1678_v60 = vmul.f32 0.003125, %v1666_v53 }
 0x5a5   : > { %v1686_v1 = vsub.f32 %v1678_v60, %v1682_v55 }
 0x5a7   : > { %v1702_v3 = vadd.f32 1e-05, %v1686_v1 }
 0x5a9   : > { %2114 = vrsqrt.f32 %v1702_v3  ;;  %vm1721_vm2 = vweird.f32 %v1702_v3 }
 0x5af   : > { %v2115_v63 = vpop.eup %2114 }
 0x5b0   : > { %v1716_v51 = vmul.f32 %v2115_v63, %v1702_v3  ;;  %vm1722_vm0 = vweird.f32 %v2115_v63 }
 0x5b1   : > { %vm1723_vm3 = vmor %vm1721_vm2, %vm1722_vm0 }
 0x5b2   : > { %v1717_v4 = vmul.f32 %v2115_v63, %v1716_v51  ;;  %v1697_v51 = vsub.f32 %v3236_v0, %v1643_v21 }
 0x5b4   : > { %v1718_v5 = vmul.f32 0.5, %v1717_v4 }
 0x5b6   : > { %v1719_v6 = vsub.f32 1.5, %v1718_v5 }
 0x5b8   : > { %v1720_v59 = vmul.f32 %v2115_v63, %v1719_v6 }
 0x5ba   : > { %v1724_v20 = vsel %vm1723_vm3, %v2115_v63, %v1720_v59  ;;  %v1696_v63 = vsub.f32 %v3234_v27, %v1643_v21 }
 0x5bb   : > { %v1748_v24 = vmul.f32 %v1724_v20, %v1692_v13  ;;  %v1749_v44 = vmul.f32 %v1724_v20, %v1693_v45  ;;  %v1750_v41 = vmul.f32 %v1724_v20, %v1694_v8 }
 0x5bd   : > { %v1768_v30 = vmul.f32 %v3280_v40, %v1748_v24  ;;  %v1769_v9 = vmul.f32 %v3282_v56, %v1749_v44  ;;  %v1770_v12 = vmul.f32 %v3287_v2, %v1750_v41 }
 0x5bf   : > { %v1788_v14 = vadd.f32 %v3289_v10, %v1768_v30  ;;  %v1789_v7 = vadd.f32 %v3291_v31, %v1769_v9  ;;  %v1790_v15 = vadd.f32 %v3295_v32, %v1770_v12 }
 0x5c1   : > { %1800 = vst [vmem:[%s3303_s14 + $0x18] sm:$0xff] %v1788_v14 }
 0x5c2   : > { %1801 = vst [vmem:[%s3303_s14 + $0x20] sm:$0xff] %v1789_v7 }
 0x5c3   : > { %1802 = vst.msk [vmem:[%s3303_s14 + $0x28] sm:$0xff] %vm983_vm1, %v1790_v15 }
 0x5da   : > { %v1640_v28 = vpop.xlane.xlu2 %1639 }
 0x5db   : > { %v1644_v47 = vmul.f32 0.003125, %v1640_v28 }
 0x5dc   : > { %v1676_v43 = vpop.xlane.xlu0 %1675 }
 0x5dd   : > { %v1680_v19 = vmul.f32 0.003125, %v1676_v43  ;;  %v1684_v58 = vmul.f32 %v1644_v47, %v1644_v47  ;;  %v1698_v37 = vsub.f32 %v3249_v54, %v1644_v47  ;;  %v1699_v39 = vsub.f32 %v3251_v57, %v1644_v47 }
 0x5de   : > { %v1700_v42 = vsub.f32 %v3253_v62, %v1644_v47  ;;  %v1695_v62 = vsub.f32 %v3232_v61, %v1643_v21 }
 0x5df   : > { %v1688_v50 = vsub.f32 %v1680_v19, %v1684_v58 }
 0x5e1   : > { %v1704_v22 = vadd.f32 1e-05, %v1688_v50 }
 0x5e2   : > { %v1671_v25 = vpop.xlane.xlu2 %1670 }
 0x5e3   : > { %v1679_v26 = vmul.f32 0.003125, %v1671_v25  ;;  %2116 = vrsqrt.f32 %v1704_v22  ;;  %vm1741_vm5 = vweird.f32 %v1704_v22 }
 0x5e5   : > { %v1687_v23 = vsub.f32 %v1679_v26, %v1683_v33 }
 0x5e7   : > { %v1703_v46 = vadd.f32 1e-05, %v1687_v23 }
 0x5e9   : > { %2118 = vrsqrt.f32 %v1703_v46  ;;  %v2117_v29 = vpop.eup %2116  ;;  %vm1731_vm9 = vweird.f32 %v1703_v46 }
 0x5ea   : > { %v1736_v16 = vmul.f32 %v2117_v29, %v1704_v22  ;;  %vm1742_vm4 = vweird.f32 %v2117_v29 }
 0x5eb   : > { %vm1743_vm6 = vmor %vm1741_vm5, %vm1742_vm4 }
 0x5ec   : > { %v1737_v38 = vmul.f32 %v2117_v29, %v1736_v16 }
 0x5ee   : > { %v1738_v35 = vmul.f32 0.5, %v1737_v38 }
 0x5ef   : > { %v2119_v34 = vpop.eup %2118 }
 0x5f0   : > { %v1726_v36 = vmul.f32 %v2119_v34, %v1703_v46  ;;  %v1739_v18 = vsub.f32 1.5, %v1738_v35  ;;  %vm1732_vm8 = vweird.f32 %v2119_v34 }
 0x5f1   : > { %vm1733_vm10 = vmor %vm1731_vm9, %vm1732_vm8 }
 0x5f2   : > { %v1727_v52 = vmul.f32 %v2119_v34, %v1726_v36  ;;  %v1740_v11 = vmul.f32 %v2117_v29, %v1739_v18 }
 0x5f4   : > { %v1728_v17 = vmul.f32 0.5, %v1727_v52  ;;  %v1744_v48 = vsel %vm1743_vm6, %v2117_v29, %v1740_v11 }
 0x5f5   : > { %v1754_v49 = vmul.f32 %v1744_v48, %v1698_v37  ;;  %v1755_v53 = vmul.f32 %v1744_v48, %v1699_v39  ;;  %v1756_v55 = vmul.f32 %v1744_v48, %v1700_v42 }
 0x5f6   : > { %v1729_v60 = vsub.f32 1.5, %v1728_v17 }
 0x5f7   : > { %v1774_v1 = vmul.f32 %v3280_v40, %v1754_v49  ;;  %v1775_v3 = vmul.f32 %v3282_v56, %v1755_v53  ;;  %v1776_v54 = vmul.f32 %v3287_v2, %v1756_v55 }
 0x5f8   : > { %v1730_v57 = vmul.f32 %v2119_v34, %v1729_v60 }
 0x5f9   : > { %v1794_v4 = vadd.f32 %v3289_v10, %v1774_v1  ;;  %v1795_v5 = vadd.f32 %v3291_v31, %v1775_v3  ;;  %v1796_v6 = vadd.f32 %v3295_v32, %v1776_v54 }
 0x5fa   : > { %v1734_v59 = vsel %vm1733_vm10, %v2119_v34, %v1730_v57 }
 0x5fb   : > { %v1751_v13 = vmul.f32 %v1734_v59, %v1695_v62  ;;  %v1752_v45 = vmul.f32 %v1734_v59, %v1696_v63  ;;  %v1753_v8 = vmul.f32 %v1734_v59, %v1697_v51  ;;  %1806 = vst [vmem:[%s3303_s14 + $0x48] sm:$0xff] %v1794_v4 }
 0x5fc   : > { %1807 = vst [vmem:[%s3303_s14 + $0x50] sm:$0xff] %v1795_v5 }
 0x5fd   : > { %v1771_v61 = vmul.f32 %v3280_v40, %v1751_v13  ;;  %v1772_v27 = vmul.f32 %v3282_v56, %v1752_v45  ;;  %v1773_v0 = vmul.f32 %v3287_v2, %v1753_v8  ;;  %1808 = vst.msk [vmem:[%s3303_s14 + $0x58] sm:$0xff] %vm983_vm1, %v1796_v6 }
 0x5ff   : > { %v1791_v20 = vadd.f32 %v3289_v10, %v1771_v61  ;;  %v1792_v24 = vadd.f32 %v3291_v31, %v1772_v27  ;;  %v1793_v44 = vadd.f32 %v3295_v32, %v1773_v0 }
 0x601   : > { %1803 = vst [vmem:[%s3303_s14 + $0x30] sm:$0xff] %v1791_v20 }
 0x602   : > { %1804 = vst [vmem:[%s3303_s14 + $0x38] sm:$0xff] %v1792_v24 }
 0x603   : > { %1805 = vst.msk [vmem:[%s3303_s14 + $0x40] sm:$0xff] %vm983_vm1, %v1793_v44 }
 0x604   : > { %2147 = shalt.err (!%p2144_p3)
}
 0x605   : > { %s2194_s28 = smov 384  }
 0x606   : > { %1965 = dma.vmem_to_hbm [thread:$0]  (%p2283_p5), %s1824_s23, 1536, %s1826_s22, %s1810_s25, %s2194_s28, %s2194_s28, %s2189_s21  }
 0x607 PF: > { %p1971_p4 = scmp.ge.s32.totalorder %s2182_s12, 2  ;;  %s1840_s14 = sand.u32 1, %s2170_s30  }
 0x608   : > { %s1841_s29 = scalar_lea.sflag [#allocation3], %s1840_s14 }
 0x609   : > { %p1968_p7 = pnand %p1971_p4, %p2287_p6 }
 0x60b   : > { %p1969_p8 = pneg %p1968_p7 }
 0x60d   : > { %2165 = dma.done.wait (%p1969_p8), %s1841_s29, 1536  }
 0x60e   : > { %2167 = vsyncadd (%p1969_p8), %s1841_s29, 4294965760  ;;  %p19_p9 = scmp.ge.s32.totalorder %s2270_s15, 4   ;;  %s3413_s30 = smov %s2174_s10 }
 0x60f   : > { %s3414_s10 = smov %s2178_s11  ;;  %s3415_s11 = smov %s2281_s18 }
 0x610   : > { %s3416_s12 = smov %s2270_s15  ;;  %21 = sbr.rel (!%p19_p9) target bundleno = 3 (0x3), region = 91 }
 0x615   :  { %1847 = vsyncpa [#allocation3], 1 }
 0x616   :  { %1849 = vsyncpa [#allocation3 + $0x1], 1 }

</bundles_post_ra>
